<compile_context>
chip_gen: v7x
topology: tpu7x:2x2x1
jax: 0.10.0
libtpu: 0.0.40
codegen_flags: <defaults>
</compile_context>

<pallas_src>
import math
import numpy as np

import jax
import jax.numpy as jnp
from jax.experimental import pallas as pl
from jax.experimental.pallas import tpu as pltpu

_EPS = 1e-5
_VMEM_LIMIT = 32 * 1024 * 1024


# ---------------------------------------------------------------------------
# trace-time matrix builders (layout plumbing, all tiny)
# ---------------------------------------------------------------------------
def _interp_matrix_1d(n_in):
    """PyTorch Upsample(scale=2, bilinear, align_corners=False) along one axis."""
    n_out = 2 * n_in
    m = np.zeros((n_out, n_in), dtype=np.float32)
    for i in range(n_out):
        src = max((i + 0.5) / 2.0 - 0.5, 0.0)
        i0 = int(math.floor(src))
        i1 = min(i0 + 1, n_in - 1)
        f = src - i0
        m[i, i0] += 1.0 - f
        m[i, i1] += f
    return m            # weights in {0.25, 0.75, 1.0}: exact in bf16


def _banded_conv_mats(kp, w):
    """Fold a 3x3 conv kernel into 3 banded matrices (one per row offset dh).

    kp: (3, 3, Ci, Co) jnp array indexed [dh, dw, ci, co] (spatial offset = idx-1).
    Returns (3, w*Ci, w*Co) bf16 with
      out[dh][wi*Ci + ci, wo*Co + co] = kp[dh, dw, ci, co]  where wi - wo = dw - 1,
    i.e. the dw taps and the W axis are folded into MXU rows/columns so the conv
    becomes 3 lane-dense matmuls with zero-padding at the w borders built in.
    """
    ci, co = kp.shape[2], kp.shape[3]
    sel = np.zeros((3, w, w), np.float32)
    for dw in range(3):
        for wo in range(w):
            wi = wo + dw - 1
            if 0 <= wi < w:
                sel[dw, wi, wo] = 1.0
    full = jnp.einsum("dij,hdco->hicjo", jnp.asarray(sel), kp)   # (3, w, Ci, w, Co)
    return full.reshape(3, w * ci, w * co).astype(jnp.bfloat16)


# ---------------------------------------------------------------------------
# in-kernel helpers
# ---------------------------------------------------------------------------
def _silu(v):
    # v * sigmoid(v); exp and the approx reciprocal both land on the EUP slot.
    return v * pl.reciprocal(1.0 + jnp.exp(-v), approx=True)


def _conv3x3_banded(a3, w_m1, w_0, w_p1, bias_t):
    """3x3 'same' conv on a lane-dense (N, H, W*Ci) bf16 slab.

    w_m1 / w_0 / w_p1: (W*Ci, W*Co) bf16 banded matrices for row offsets -1/0/+1.
    bias_t: (1, W*Co) f32 channel bias tiled to the lane layout.
    Returns (N*H, W*Co) f32.
    """
    n, h, wc_in = a3.shape
    rows = n * h
    a_flat = a3.reshape(rows, wc_in)
    acc = jnp.dot(a_flat, w_0, preferred_element_type=jnp.float32)
    zrow = jnp.zeros((n, 1, wc_in), a3.dtype)
    a_dn = jnp.concatenate([zrow, a3[:, :-1]], axis=1).reshape(rows, wc_in)  # inp[h-1]
    a_up = jnp.concatenate([a3[:, 1:], zrow], axis=1).reshape(rows, wc_in)   # inp[h+1]
    acc = acc + jnp.dot(a_dn, w_m1, preferred_element_type=jnp.float32)
    acc = acc + jnp.dot(a_up, w_p1, preferred_element_type=jnp.float32)
    return acc + bias_t


# ---------------------------------------------------------------------------
# kernels
# ---------------------------------------------------------------------------
def upsample_conv_kernel(xf_ref, uh_ref, uw_ref, w_ref, b_ref, o_ref):
    # xf: (N*Hin, Win*Cin) bf16         | uh: (N*Hout, N*Hin) bf16 (block-diag over N)
    # uw: (Win*Cin, Wout*Cin) bf16       | w : (3, Wout*Cin, Wout*Cout) bf16 banded conv
    # b : (1, Wout*Cout) f32             | o : (N, Hout, Wout*Cout) f32
    n, hout, wc_out = o_ref.shape
    xh = jnp.dot(uh_ref[...], xf_ref[...], preferred_element_type=jnp.float32)
    up = jnp.dot(xh.astype(jnp.bfloat16), uw_ref[...],
                 preferred_element_type=jnp.float32)          # (N*Hout, Wout*Cin)
    up3 = up.astype(jnp.bfloat16).reshape(n, hout, up.shape[-1])
    out = _conv3x3_banded(up3, w_ref[0], w_ref[1], w_ref[2], b_ref[...])
    o_ref[...] = out.reshape(n, hout, wc_out)


def make_residual_stack_kernel(c):
    """One grid step == one Residual layer; activation carried in VMEM scratch."""

    def kernel(act0_ref, p_ref, emb_ref,
               g1_ref, be1_ref, w1_ref, cb1_ref,
               g2_ref, be2_ref, w2_ref, cb2_ref,
               o_ref, acc_ref):
        layer = pl.program_id(0)

        @pl.when(layer == 0)
        def _():
            acc_ref[...] = act0_ref[...]

        n, hh, wc = acc_ref.shape
        rows = n * hh
        inv_cnt = 1.0 / float(rows * (wc // c))     # count = N * H * W per channel
        x3 = acc_ref[...]
        x = x3.reshape(rows, wc)
        p = p_ref[...]                              # (wc, wc) 0/1 per-channel projector

        def bn(v, gamma_t, beta_t):
            # training-mode BatchNorm, biased variance, single pass over v (f32).
            s1 = jnp.sum(v, axis=0, keepdims=True)                 # (1, wc)
            s2 = jnp.sum(v * v, axis=0, keepdims=True)
            mean_t = jnp.dot(s1, p, preferred_element_type=jnp.float32) * inv_cnt
            ex2_t = jnp.dot(s2, p, preferred_element_type=jnp.float32) * inv_cnt
            var_t = jnp.maximum(ex2_t - mean_t * mean_t, 0.0)
            return (v - mean_t) * jax.lax.rsqrt(var_t + _EPS) * gamma_t + beta_t

        emb = emb_ref[0]                            # (N, 1, wc) f32 = adaptor(t)+adaptor(y)

        n1 = bn(_silu(x), g1_ref[0], be1_ref[0]).astype(jnp.bfloat16).reshape(n, hh, wc)
        h1 = _conv3x3_banded(n1, w1_ref[0, 0], w1_ref[0, 1], w1_ref[0, 2], cb1_ref[0])
        h1 = (h1.reshape(n, hh, wc) + emb).reshape(rows, wc)

        n2 = bn(_silu(h1), g2_ref[0], be2_ref[0]).astype(jnp.bfloat16).reshape(n, hh, wc)
        h2 = _conv3x3_banded(n2, w2_ref[0, 0], w2_ref[0, 1], w2_ref[0, 2], cb2_ref[0])

        new = (x + h2).reshape(n, hh, wc)
        acc_ref[...] = new

        @pl.when(layer == pl.num_programs(0) - 1)
        def _():
            o_ref[...] = new

    return kernel


# ---------------------------------------------------------------------------
# wrapper
# ---------------------------------------------------------------------------
def _const_spec(shape):
    nd = len(shape)
    return pl.BlockSpec(tuple(shape), lambda i, nd=nd: (0,) * nd)


def _layer_spec(shape):
    nd = len(shape)
    return pl.BlockSpec((1,) + tuple(shape[1:]),
                        lambda l, nd=nd: (l,) + (0,) * (nd - 1))


def decoder_forward(params, x_nchw, t, y):
    n, cin, h, w = x_nchw.shape
    hh, ww = 2 * h, 2 * w
    cout = params["up_b"].shape[-1]
    wc = ww * cout

    # static interpolation / layout matrices (trace-time constants)
    # TODO(synk): at large N the block-diag H-interp wastes an Nx factor in one
    # tiny matmul; switch to a per-image batched einsum if it ever matters.
    uh_blk = jnp.asarray(np.kron(np.eye(n, dtype=np.float32), _interp_matrix_1d(h)),
                         jnp.bfloat16)                                 # (N*2H, N*H)
    uw_fold = jnp.asarray(np.kron(_interp_matrix_1d(w).T,
                                  np.eye(cin, dtype=np.float32)),
                          jnp.bfloat16)                                # (W*Cin, 2W*Cin)
    p_mat = jnp.asarray(np.kron(np.ones((ww, ww), np.float32),
                                np.eye(cout, dtype=np.float32)),
                        jnp.float32)                                   # (wc, wc)

    # NCHW -> lane-dense bf16 (N*H, W*Cin)
    xf = (jnp.transpose(x_nchw, (0, 2, 3, 1))
          .reshape(n * h, w * cin).astype(jnp.bfloat16))

    w_up = _banded_conv_mats(params["up_w"], ww)                       # (3, 2W*Cin, 2W*Cout)
    b_up = jnp.tile(params["up_b"], (1, ww))                           # (1, wc)

    cp = pltpu.CompilerParams(dimension_semantics=("arbitrary",),
                              vmem_limit_bytes=_VMEM_LIMIT)

    act = pl.pallas_call(
        upsample_conv_kernel,
        grid=(1,),
        in_specs=[_const_spec(a.shape) for a in (xf, uh_blk, uw_fold, w_up, b_up)],
        out_specs=_const_spec((n, hh, wc)),
        out_shape=jax.ShapeDtypeStruct((n, hh, wc), jnp.float32),
        compiler_params=cp,
    )(xf, uh_blk, uw_fold, w_up, b_up)

    layers = params["layers"]
    if layers:
        num_l = len(layers)

        # hoisted time/y adaptor: one stacked batched matmul for all layers (XLA).
        tw1 = jnp.stack([lp["tw1"] for lp in layers])                  # (L, D, D)
        tb1 = jnp.stack([lp["tb1"] for lp in layers])                  # (L, 1, D)
        tw2 = jnp.stack([lp["tw2"] for lp in layers])                  # (L, D, C)
        tb2 = jnp.stack([lp["tb2"] for lp in layers])                  # (L, 1, C)
        ty = jnp.concatenate([t, y], axis=0)                           # (2N, D)
        hid = jax.nn.silu(jnp.einsum("bd,lde->lbe", ty, tw1) + tb1)
        add = jnp.einsum("lbe,lec->lbc", hid, tw2) + tb2               # (L, 2N, C)
        emb = add[:, :n] + add[:, n:]                                  # (L, N, C)
        emb_all = jnp.tile(emb, (1, 1, ww)).reshape(num_l, n, 1, wc)   # lane layout

        def tile_c(v):                                                 # (1,C) -> (1,W*C)
            return jnp.tile(v, (1, ww))

        g1_all = jnp.stack([tile_c(lp["bn1_g"]) for lp in layers])
        be1_all = jnp.stack([tile_c(lp["bn1_b"]) for lp in layers])
        cb1_all = jnp.stack([tile_c(lp["cb1"]) for lp in layers])
        g2_all = jnp.stack([tile_c(lp["bn2_g"]) for lp in layers])
        be2_all = jnp.stack([tile_c(lp["bn2_b"]) for lp in layers])
        cb2_all = jnp.stack([tile_c(lp["cb2"]) for lp in layers])
        w1_all = jnp.stack([_banded_conv_mats(lp["cw1"], ww) for lp in layers])
        w2_all = jnp.stack([_banded_conv_mats(lp["cw2"], ww) for lp in layers])

        act = pl.pallas_call(
            make_residual_stack_kernel(cout),
            grid=(num_l,),
            in_specs=[_const_spec(act.shape), _const_spec(p_mat.shape),
                      _layer_spec(emb_all.shape),
                      _layer_spec(g1_all.shape), _layer_spec(be1_all.shape),
                      _layer_spec(w1_all.shape), _layer_spec(cb1_all.shape),
                      _layer_spec(g2_all.shape), _layer_spec(be2_all.shape),
                      _layer_spec(w2_all.shape), _layer_spec(cb2_all.shape)],
            out_specs=_const_spec(act.shape),
            out_shape=jax.ShapeDtypeStruct(act.shape, jnp.float32),
            scratch_shapes=[pltpu.VMEM(tuple(act.shape), jnp.float32)],
            compiler_params=cp,
        )(act, p_mat, emb_all, g1_all, be1_all, w1_all, cb1_all,
          g2_all, be2_all, w2_all, cb2_all)

    out_nhwc = act.reshape(n, hh, ww, cout)
    return jnp.transpose(out_nhwc, (0, 3, 1, 2))                       # back to NCHW


# ---------------------------------------------------------------------------
# deterministic parameter init (natural shapes; banded/tiled forms built in fwd)
# ---------------------------------------------------------------------------
def init_params(key, cin, cout, d, n_layers):
    def nrm(k, shape, scale=0.1):
        return scale * jax.random.normal(k, shape, jnp.float32)

    keys = jax.random.split(key, 2 + n_layers)
    params = {
        "up_w": nrm(keys[0], (3, 3, cin, cout)),   # [dh, dw, ci, co]
        "up_b": nrm(keys[1], (1, cout)),
        "layers": [],
    }
    for li in range(n_layers):
        lk = jax.random.split(keys[2 + li], 12)
        params["layers"].append({
            "bn1_g": 1.0 + nrm(lk[0], (1, cout)),
            "bn1_b": nrm(lk[1], (1, cout)),
            "cw1": nrm(lk[2], (3, 3, cout, cout)),
            "cb1": nrm(lk[3], (1, cout)),
            "bn2_g": 1.0 + nrm(lk[4], (1, cout)),
            "bn2_b": nrm(lk[5], (1, cout)),
            "cw2": nrm(lk[6], (3, 3, cout, cout)),
            "cb2": nrm(lk[7], (1, cout)),
            "tw1": nrm(lk[8], (d, d)),
            "tb1": nrm(lk[9], (1, d)),
            "tw2": nrm(lk[10], (d, cout)),
            "tb2": nrm(lk[11], (1, cout)),
        })
    # TODO(synk): y_adaptor params exist in the reference __init__ but are never
    # used by its forward (it routes y through time_adaptor); intentionally omitted.
    return params


# ---------------------------------------------------------------------------
if __name__ == "__main__":
    N, Cin, Cout = 2, 8, 16
    H = W = 8                    # input spatial; output is 16x16 after upsample
    D = 16                       # t_emb_dim == y_emb_dim (required by ref forward)
    n_res_layers = 2

    key = jax.random.PRNGKey(0)
    k_params, kx, kt, ky = jax.random.split(key, 4)
    params = init_params(k_params, Cin, Cout, D, n_res_layers)

    x = jax.random.normal(kx, (N, Cin, H, W), jnp.float32)
    t = jax.random.normal(kt, (N, D), jnp.float32)
    y = jax.random.normal(ky, (N, D), jnp.float32)

    out = jax.jit(decoder_forward)(params, x, t, y)
    out = jax.block_until_ready(out)
    assert out.shape == (N, Cout, 2 * H, 2 * W), out.shape
    assert bool(jnp.all(jnp.isfinite(out)))
    print("KERNEL_OK")
</pallas_src>

<mosaic_0001>
module attributes {stable_mosaic.version = 11 : i64} {
  func.func @upsample_conv_kernel(%arg0: i32, %arg1: memref<16x64xbf16, #tpu.memory_space<vmem>>, %arg2: memref<32x16xbf16, #tpu.memory_space<vmem>>, %arg3: memref<64x128xbf16, #tpu.memory_space<vmem>>, %arg4: memref<3x128x256xbf16, #tpu.memory_space<vmem>>, %arg5: memref<1x256xf32, #tpu.memory_space<vmem>>, %arg6: memref<2x16x256xf32, #tpu.memory_space<vmem>>) attributes {dimension_semantics = [#tpu.dimension_semantics<arbitrary>], iteration_bounds = array<i64: 1>, scalar_prefetch = 0 : i64, scratch_operands = 0 : i64, tpu.core_type = #tpu.core_type<tc>, window_params = [{pipeline_mode = #tpu.pipeline_mode<synchronous>, transform_indices = @transform_0, window_bounds = array<i64: 16, 64>}, {pipeline_mode = #tpu.pipeline_mode<synchronous>, transform_indices = @transform_1, window_bounds = array<i64: 32, 16>}, {pipeline_mode = #tpu.pipeline_mode<synchronous>, transform_indices = @transform_2, window_bounds = array<i64: 64, 128>}, {pipeline_mode = #tpu.pipeline_mode<synchronous>, transform_indices = @transform_3, window_bounds = array<i64: 3, 128, 256>}, {pipeline_mode = #tpu.pipeline_mode<synchronous>, transform_indices = @transform_4, window_bounds = array<i64: 1, 256>}, {pipeline_mode = #tpu.pipeline_mode<synchronous>, transform_indices = @transform_5, window_bounds = array<i64: 2, 16, 256>}]} {
    %c0 = arith.constant 0 : index
    %c0_0 = arith.constant 0 : index
    %0 = vector.load %arg2[%c0, %c0_0] : memref<32x16xbf16, #tpu.memory_space<vmem>>, vector<32x16xbf16>
    %c0_1 = arith.constant 0 : index
    %c0_2 = arith.constant 0 : index
    %1 = vector.load %arg1[%c0_1, %c0_2] : memref<16x64xbf16, #tpu.memory_space<vmem>>, vector<16x64xbf16>
    %cst = arith.constant dense<0.000000e+00> : vector<32x64xf32>
    %2 = tpu.matmul %0, %1, %cst {dimension_numbers = #tpu.dot_dimension_numbers<[1], [0], [0], [1], [0, 0, 1, 1], [], []>} : vector<32x16xbf16>, vector<16x64xbf16>, vector<32x64xf32> -> vector<32x64xf32>
    %3 = arith.truncf %2 : vector<32x64xf32> to vector<32x64xbf16>
    %c0_3 = arith.constant 0 : index
    %c0_4 = arith.constant 0 : index
    %4 = vector.load %arg3[%c0_3, %c0_4] : memref<64x128xbf16, #tpu.memory_space<vmem>>, vector<64x128xbf16>
    %cst_5 = arith.constant dense<0.000000e+00> : vector<32x128xf32>
    %5 = tpu.matmul %3, %4, %cst_5 {dimension_numbers = #tpu.dot_dimension_numbers<[1], [0], [0], [1], [0, 0, 1, 1], [], []>} : vector<32x64xbf16>, vector<64x128xbf16>, vector<32x128xf32> -> vector<32x128xf32>
    %6 = arith.truncf %5 : vector<32x128xf32> to vector<32x128xbf16>
    %7 = vector.shape_cast %6 : vector<32x128xbf16> to vector<2x16x128xbf16>
    %c0_6 = arith.constant 0 : index
    %c0_7 = arith.constant 0 : index
    %c0_8 = arith.constant 0 : index
    %8 = vector.load %arg4[%c0_6, %c0_7, %c0_8] : memref<3x128x256xbf16, #tpu.memory_space<vmem>>, vector<1x128x256xbf16>
    %9 = vector.shape_cast %8 : vector<1x128x256xbf16> to vector<128x256xbf16>
    %c1 = arith.constant 1 : index
    %c0_9 = arith.constant 0 : index
    %c0_10 = arith.constant 0 : index
    %10 = vector.load %arg4[%c1, %c0_9, %c0_10] : memref<3x128x256xbf16, #tpu.memory_space<vmem>>, vector<1x128x256xbf16>
    %11 = vector.shape_cast %10 : vector<1x128x256xbf16> to vector<128x256xbf16>
    %c2 = arith.constant 2 : index
    %c0_11 = arith.constant 0 : index
    %c0_12 = arith.constant 0 : index
    %12 = vector.load %arg4[%c2, %c0_11, %c0_12] : memref<3x128x256xbf16, #tpu.memory_space<vmem>>, vector<1x128x256xbf16>
    %13 = vector.shape_cast %12 : vector<1x128x256xbf16> to vector<128x256xbf16>
    %c0_13 = arith.constant 0 : index
    %c0_14 = arith.constant 0 : index
    %14 = vector.load %arg5[%c0_13, %c0_14] : memref<1x256xf32, #tpu.memory_space<vmem>>, vector<1x256xf32>
    %15 = vector.shape_cast %7 : vector<2x16x128xbf16> to vector<32x128xbf16>
    %cst_15 = arith.constant dense<0.000000e+00> : vector<32x256xf32>
    %16 = tpu.matmul %15, %11, %cst_15 {dimension_numbers = #tpu.dot_dimension_numbers<[1], [0], [0], [1], [0, 0, 1, 1], [], []>} : vector<32x128xbf16>, vector<128x256xbf16>, vector<32x256xf32> -> vector<32x256xf32>
    %cst_16 = arith.constant 0.000000e+00 : bf16
    %17 = vector.broadcast %cst_16 : bf16 to vector<2x1x128xbf16>
    %18 = vector.extract_strided_slice %7 {offsets = [0, 0, 0], sizes = [2, 15, 128], strides = [1, 1, 1]} : vector<2x16x128xbf16> to vector<2x15x128xbf16>
    %19 = tpu.concatenate %17, %18 in 1 : vector<2x1x128xbf16>, vector<2x15x128xbf16> -> vector<2x16x128xbf16>
    %20 = vector.shape_cast %19 : vector<2x16x128xbf16> to vector<32x128xbf16>
    %21 = vector.extract_strided_slice %7 {offsets = [0, 1, 0], sizes = [2, 15, 128], strides = [1, 1, 1]} : vector<2x16x128xbf16> to vector<2x15x128xbf16>
    %22 = tpu.concatenate %21, %17 in 1 : vector<2x15x128xbf16>, vector<2x1x128xbf16> -> vector<2x16x128xbf16>
    %23 = vector.shape_cast %22 : vector<2x16x128xbf16> to vector<32x128xbf16>
    %cst_17 = arith.constant dense<0.000000e+00> : vector<32x256xf32>
    %24 = tpu.matmul %20, %9, %cst_17 {dimension_numbers = #tpu.dot_dimension_numbers<[1], [0], [0], [1], [0, 0, 1, 1], [], []>} : vector<32x128xbf16>, vector<128x256xbf16>, vector<32x256xf32> -> vector<32x256xf32>
    %25 = arith.addf %16, %24 : vector<32x256xf32>
    %cst_18 = arith.constant dense<0.000000e+00> : vector<32x256xf32>
    %26 = tpu.matmul %23, %13, %cst_18 {dimension_numbers = #tpu.dot_dimension_numbers<[1], [0], [0], [1], [0, 0, 1, 1], [], []>} : vector<32x128xbf16>, vector<128x256xbf16>, vector<32x256xf32> -> vector<32x256xf32>
    %27 = arith.addf %25, %26 : vector<32x256xf32>
    %28 = vector.broadcast %14 : vector<1x256xf32> to vector<32x256xf32>
    %29 = arith.addf %27, %28 : vector<32x256xf32>
    %30 = vector.shape_cast %29 : vector<32x256xf32> to vector<2x16x256xf32>
    %c0_19 = arith.constant 0 : index
    %c0_20 = arith.constant 0 : index
    %c0_21 = arith.constant 0 : index
    %31 = vector.load %arg6[%c0_19, %c0_20, %c0_21] : memref<2x16x256xf32, #tpu.memory_space<vmem>>, vector<2x16x256xf32>
    tpu.vector_store %arg6[%c0_19, %c0_20, %c0_21], %30 {strides = array<i32>} : memref<2x16x256xf32, #tpu.memory_space<vmem>>, vector<2x16x256xf32>,
    return
  }
  func.func @transform_0(%arg0: i32) -> (i32, i32) {
    %c0_i32 = arith.constant 0 : i32
    %c0_i32_0 = arith.constant 0 : i32
    %c0_i32_1 = arith.constant 0 : i32
    return %c0_i32, %c0_i32_0 : i32, i32
  }
  func.func @transform_1(%arg0: i32) -> (i32, i32) {
    %c0_i32 = arith.constant 0 : i32
    %c0_i32_0 = arith.constant 0 : i32
    %c0_i32_1 = arith.constant 0 : i32
    return %c0_i32, %c0_i32_0 : i32, i32
  }
  func.func @transform_2(%arg0: i32) -> (i32, i32) {
    %c0_i32 = arith.constant 0 : i32
    %c0_i32_0 = arith.constant 0 : i32
    %c0_i32_1 = arith.constant 0 : i32
    return %c0_i32, %c0_i32_0 : i32, i32
  }
  func.func @transform_3(%arg0: i32) -> (i32, i32, i32) {
    %c0_i32 = arith.constant 0 : i32
    %c0_i32_0 = arith.constant 0 : i32
    %c0_i32_1 = arith.constant 0 : i32
    %c0_i32_2 = arith.constant 0 : i32
    return %c0_i32, %c0_i32_0, %c0_i32_1 : i32, i32, i32
  }
  func.func @transform_4(%arg0: i32) -> (i32, i32) {
    %c0_i32 = arith.constant 0 : i32
    %c0_i32_0 = arith.constant 0 : i32
    %c0_i32_1 = arith.constant 0 : i32
    return %c0_i32, %c0_i32_0 : i32, i32
  }
  func.func @transform_5(%arg0: i32) -> (i32, i32, i32) {
    %c0_i32 = arith.constant 0 : i32
    %c0_i32_0 = arith.constant 0 : i32
    %c0_i32_1 = arith.constant 0 : i32
    %c0_i32_2 = arith.constant 0 : i32
    return %c0_i32, %c0_i32_0, %c0_i32_1 : i32, i32, i32
  }
}

module attributes {stable_mosaic.version = 11 : i64} {
  func.func @kernel(%arg0: i32, %arg1: memref<2x16x256xf32, #tpu.memory_space<vmem>>, %arg2: memref<256x256xf32, #tpu.memory_space<vmem>>, %arg3: memref<1x2x1x256xf32, #tpu.memory_space<vmem>>, %arg4: memref<1x1x256xf32, #tpu.memory_space<vmem>>, %arg5: memref<1x1x256xf32, #tpu.memory_space<vmem>>, %arg6: memref<1x3x256x256xbf16, #tpu.memory_space<vmem>>, %arg7: memref<1x1x256xf32, #tpu.memory_space<vmem>>, %arg8: memref<1x1x256xf32, #tpu.memory_space<vmem>>, %arg9: memref<1x1x256xf32, #tpu.memory_space<vmem>>, %arg10: memref<1x3x256x256xbf16, #tpu.memory_space<vmem>>, %arg11: memref<1x1x256xf32, #tpu.memory_space<vmem>>, %arg12: memref<2x16x256xf32, #tpu.memory_space<vmem>>, %arg13: memref<2x16x256xf32, #tpu.memory_space<vmem>>) attributes {dimension_semantics = [#tpu.dimension_semantics<arbitrary>], iteration_bounds = array<i64: 2>, scalar_prefetch = 0 : i64, scratch_operands = 1 : i64, tpu.core_type = #tpu.core_type<tc>, window_params = [{pipeline_mode = #tpu.pipeline_mode<synchronous>, transform_indices = @transform_0, window_bounds = array<i64: 2, 16, 256>}, {pipeline_mode = #tpu.pipeline_mode<synchronous>, transform_indices = @transform_1, window_bounds = array<i64: 256, 256>}, {transform_indices = @transform_2, window_bounds = array<i64: 1, 2, 1, 256>}, {transform_indices = @transform_3, window_bounds = array<i64: 1, 1, 256>}, {transform_indices = @transform_4, window_bounds = array<i64: 1, 1, 256>}, {transform_indices = @transform_5, window_bounds = array<i64: 1, 3, 256, 256>}, {transform_indices = @transform_6, window_bounds = array<i64: 1, 1, 256>}, {transform_indices = @transform_7, window_bounds = array<i64: 1, 1, 256>}, {transform_indices = @transform_8, window_bounds = array<i64: 1, 1, 256>}, {transform_indices = @transform_9, window_bounds = array<i64: 1, 3, 256, 256>}, {transform_indices = @transform_10, window_bounds = array<i64: 1, 1, 256>}, {pipeline_mode = #tpu.pipeline_mode<synchronous>, transform_indices = @transform_11, window_bounds = array<i64: 2, 16, 256>}]} {
    %c0_i32 = arith.constant 0 : i32
    %0 = arith.cmpi eq, %arg0, %c0_i32 : i32
    %1 = arith.extui %0 : i1 to i32
    %c0_i32_0 = arith.constant 0 : i32
    %2 = arith.cmpi ne, %1, %c0_i32_0 : i32
    scf.if %2 {
      %c0_80 = arith.constant 0 : index
      %c0_81 = arith.constant 0 : index
      %c0_82 = arith.constant 0 : index
      %142 = vector.load %arg1[%c0_80, %c0_81, %c0_82] : memref<2x16x256xf32, #tpu.memory_space<vmem>>, vector<2x16x256xf32>
      %c0_83 = arith.constant 0 : index
      %c0_84 = arith.constant 0 : index
      %c0_85 = arith.constant 0 : index
      %143 = vector.load %arg13[%c0_83, %c0_84, %c0_85] : memref<2x16x256xf32, #tpu.memory_space<vmem>>, vector<2x16x256xf32>
      tpu.vector_store %arg13[%c0_83, %c0_84, %c0_85], %142 {strides = array<i32>} : memref<2x16x256xf32, #tpu.memory_space<vmem>>, vector<2x16x256xf32>,
    } else {
    }
    %c0 = arith.constant 0 : index
    %c0_1 = arith.constant 0 : index
    %c0_2 = arith.constant 0 : index
    %3 = vector.load %arg13[%c0, %c0_1, %c0_2] : memref<2x16x256xf32, #tpu.memory_space<vmem>>, vector<2x16x256xf32>
    %4 = vector.shape_cast %3 : vector<2x16x256xf32> to vector<32x256xf32>
    %c0_3 = arith.constant 0 : index
    %c0_4 = arith.constant 0 : index
    %5 = vector.load %arg2[%c0_3, %c0_4] : memref<256x256xf32, #tpu.memory_space<vmem>>, vector<256x256xf32>
    %c0_5 = arith.constant 0 : index
    %c0_6 = arith.constant 0 : index
    %c0_7 = arith.constant 0 : index
    %c0_8 = arith.constant 0 : index
    %6 = vector.load %arg3[%c0_5, %c0_6, %c0_7, %c0_8] : memref<1x2x1x256xf32, #tpu.memory_space<vmem>>, vector<1x2x1x256xf32>
    %7 = vector.shape_cast %6 : vector<1x2x1x256xf32> to vector<2x1x256xf32>
    %cst = arith.constant 0.000000e+00 : f32
    %8 = vector.broadcast %cst : f32 to vector<32x256xf32>
    %9 = arith.subf %8, %4 : vector<32x256xf32>
    %10 = math.exp %9 : vector<32x256xf32>
    %cst_9 = arith.constant 1.000000e+00 : f32
    %11 = vector.broadcast %cst_9 : f32 to vector<32x256xf32>
    %12 = arith.addf %11, %10 : vector<32x256xf32>
    %13 = tpu.reciprocal %12 {approx = true} : vector<32x256xf32> -> vector<32x256xf32>
    %14 = arith.mulf %4, %13 : vector<32x256xf32>
    %c0_10 = arith.constant 0 : index
    %c0_11 = arith.constant 0 : index
    %c0_12 = arith.constant 0 : index
    %15 = vector.load %arg4[%c0_10, %c0_11, %c0_12] : memref<1x1x256xf32, #tpu.memory_space<vmem>>, vector<1x1x256xf32>
    %16 = vector.shape_cast %15 : vector<1x1x256xf32> to vector<1x256xf32>
    %c0_13 = arith.constant 0 : index
    %c0_14 = arith.constant 0 : index
    %c0_15 = arith.constant 0 : index
    %17 = vector.load %arg5[%c0_13, %c0_14, %c0_15] : memref<1x1x256xf32, #tpu.memory_space<vmem>>, vector<1x1x256xf32>
    %18 = vector.shape_cast %17 : vector<1x1x256xf32> to vector<1x256xf32>
    %cst_16 = arith.constant dense<0.000000e+00> : vector<256xf32>
    %19 = vector.multi_reduction <add>, %14, %cst_16 [0] : vector<32x256xf32> to vector<256xf32>
    %20 = vector.shape_cast %19 : vector<256xf32> to vector<1x256xf32>
    %21 = arith.mulf %14, %14 : vector<32x256xf32>
    %cst_17 = arith.constant dense<0.000000e+00> : vector<256xf32>
    %22 = vector.multi_reduction <add>, %21, %cst_17 [0] : vector<32x256xf32> to vector<256xf32>
    %23 = vector.shape_cast %22 : vector<256xf32> to vector<1x256xf32>
    %cst_18 = arith.constant dense<0.000000e+00> : vector<1x256xf32>
    %24 = tpu.matmul %20, %5, %cst_18 {dimension_numbers = #tpu.dot_dimension_numbers<[1], [0], [0], [1], [0, 0, 1, 1], [], []>} : vector<1x256xf32>, vector<256x256xf32>, vector<1x256xf32> -> vector<1x256xf32>
    %cst_19 = arith.constant 0.001953125 : f32
    %25 = vector.broadcast %cst_19 : f32 to vector<1x256xf32>
    %26 = arith.mulf %24, %25 : vector<1x256xf32>
    %cst_20 = arith.constant dense<0.000000e+00> : vector<1x256xf32>
    %27 = tpu.matmul %23, %5, %cst_20 {dimension_numbers = #tpu.dot_dimension_numbers<[1], [0], [0], [1], [0, 0, 1, 1], [], []>} : vector<1x256xf32>, vector<256x256xf32>, vector<1x256xf32> -> vector<1x256xf32>
    %cst_21 = arith.constant 0.001953125 : f32
    %28 = vector.broadcast %cst_21 : f32 to vector<1x256xf32>
    %29 = arith.mulf %27, %28 : vector<1x256xf32>
    %30 = arith.mulf %26, %26 : vector<1x256xf32>
    %31 = arith.subf %29, %30 : vector<1x256xf32>
    %cst_22 = arith.constant 0.000000e+00 : f32
    %32 = vector.broadcast %cst_22 : f32 to vector<1x256xf32>
    %33 = arith.maximumf %31, %32 : vector<1x256xf32>
    %34 = vector.broadcast %26 : vector<1x256xf32> to vector<32x256xf32>
    %35 = arith.subf %14, %34 : vector<32x256xf32>
    %cst_23 = arith.constant 9.99999974E-6 : f32
    %36 = vector.broadcast %cst_23 : f32 to vector<1x256xf32>
    %37 = arith.addf %33, %36 : vector<1x256xf32>
    %38 = math.rsqrt %37 : vector<1x256xf32>
    %39 = vector.broadcast %38 : vector<1x256xf32> to vector<32x256xf32>
    %40 = arith.mulf %35, %39 : vector<32x256xf32>
    %41 = vector.broadcast %16 : vector<1x256xf32> to vector<32x256xf32>
    %42 = arith.mulf %40, %41 : vector<32x256xf32>
    %43 = vector.broadcast %18 : vector<1x256xf32> to vector<32x256xf32>
    %44 = arith.addf %42, %43 : vector<32x256xf32>
    %45 = arith.truncf %44 : vector<32x256xf32> to vector<32x256xbf16>
    %46 = vector.shape_cast %45 : vector<32x256xbf16> to vector<2x16x256xbf16>
    %c0_24 = arith.constant 0 : index
    %c0_25 = arith.constant 0 : index
    %c0_26 = arith.constant 0 : index
    %c0_27 = arith.constant 0 : index
    %47 = vector.load %arg6[%c0_24, %c0_25, %c0_26, %c0_27] : memref<1x3x256x256xbf16, #tpu.memory_space<vmem>>, vector<1x1x256x256xbf16>
    %48 = vector.shape_cast %47 : vector<1x1x256x256xbf16> to vector<256x256xbf16>
    %c0_28 = arith.constant 0 : index
    %c1 = arith.constant 1 : index
    %c0_29 = arith.constant 0 : index
    %c0_30 = arith.constant 0 : index
    %49 = vector.load %arg6[%c0_28, %c1, %c0_29, %c0_30] : memref<1x3x256x256xbf16, #tpu.memory_space<vmem>>, vector<1x1x256x256xbf16>
    %50 = vector.shape_cast %49 : vector<1x1x256x256xbf16> to vector<256x256xbf16>
    %c0_31 = arith.constant 0 : index
    %c2 = arith.constant 2 : index
    %c0_32 = arith.constant 0 : index
    %c0_33 = arith.constant 0 : index
    %51 = vector.load %arg6[%c0_31, %c2, %c0_32, %c0_33] : memref<1x3x256x256xbf16, #tpu.memory_space<vmem>>, vector<1x1x256x256xbf16>
    %52 = vector.shape_cast %51 : vector<1x1x256x256xbf16> to vector<256x256xbf16>
    %c0_34 = arith.constant 0 : index
    %c0_35 = arith.constant 0 : index
    %c0_36 = arith.constant 0 : index
    %53 = vector.load %arg7[%c0_34, %c0_35, %c0_36] : memref<1x1x256xf32, #tpu.memory_space<vmem>>, vector<1x1x256xf32>
    %54 = vector.shape_cast %53 : vector<1x1x256xf32> to vector<1x256xf32>
    %55 = vector.shape_cast %46 : vector<2x16x256xbf16> to vector<32x256xbf16>
    %cst_37 = arith.constant dense<0.000000e+00> : vector<32x256xf32>
    %56 = tpu.matmul %55, %50, %cst_37 {dimension_numbers = #tpu.dot_dimension_numbers<[1], [0], [0], [1], [0, 0, 1, 1], [], []>} : vector<32x256xbf16>, vector<256x256xbf16>, vector<32x256xf32> -> vector<32x256xf32>
    %cst_38 = arith.constant 0.000000e+00 : bf16
    %57 = vector.broadcast %cst_38 : bf16 to vector<2x1x256xbf16>
    %58 = vector.extract_strided_slice %46 {offsets = [0, 0, 0], sizes = [2, 15, 256], strides = [1, 1, 1]} : vector<2x16x256xbf16> to vector<2x15x256xbf16>
    %59 = tpu.concatenate %57, %58 in 1 : vector<2x1x256xbf16>, vector<2x15x256xbf16> -> vector<2x16x256xbf16>
    %60 = vector.shape_cast %59 : vector<2x16x256xbf16> to vector<32x256xbf16>
    %61 = vector.extract_strided_slice %46 {offsets = [0, 1, 0], sizes = [2, 15, 256], strides = [1, 1, 1]} : vector<2x16x256xbf16> to vector<2x15x256xbf16>
    %62 = tpu.concatenate %61, %57 in 1 : vector<2x15x256xbf16>, vector<2x1x256xbf16> -> vector<2x16x256xbf16>
    %63 = vector.shape_cast %62 : vector<2x16x256xbf16> to vector<32x256xbf16>
    %cst_39 = arith.constant dense<0.000000e+00> : vector<32x256xf32>
    %64 = tpu.matmul %60, %48, %cst_39 {dimension_numbers = #tpu.dot_dimension_numbers<[1], [0], [0], [1], [0, 0, 1, 1], [], []>} : vector<32x256xbf16>, vector<256x256xbf16>, vector<32x256xf32> -> vector<32x256xf32>
    %65 = arith.addf %56, %64 : vector<32x256xf32>
    %cst_40 = arith.constant dense<0.000000e+00> : vector<32x256xf32>
    %66 = tpu.matmul %63, %52, %cst_40 {dimension_numbers = #tpu.dot_dimension_numbers<[1], [0], [0], [1], [0, 0, 1, 1], [], []>} : vector<32x256xbf16>, vector<256x256xbf16>, vector<32x256xf32> -> vector<32x256xf32>
    %67 = arith.addf %65, %66 : vector<32x256xf32>
    %68 = vector.broadcast %54 : vector<1x256xf32> to vector<32x256xf32>
    %69 = arith.addf %67, %68 : vector<32x256xf32>
    %70 = vector.shape_cast %69 : vector<32x256xf32> to vector<2x16x256xf32>
    %71 = vector.broadcast %7 : vector<2x1x256xf32> to vector<2x16x256xf32>
    %72 = arith.addf %70, %71 : vector<2x16x256xf32>
    %73 = vector.shape_cast %72 : vector<2x16x256xf32> to vector<32x256xf32>
    %cst_41 = arith.constant 0.000000e+00 : f32
    %74 = vector.broadcast %cst_41 : f32 to vector<32x256xf32>
    %75 = arith.subf %74, %73 : vector<32x256xf32>
    %76 = math.exp %75 : vector<32x256xf32>
    %cst_42 = arith.constant 1.000000e+00 : f32
    %77 = vector.broadcast %cst_42 : f32 to vector<32x256xf32>
    %78 = arith.addf %77, %76 : vector<32x256xf32>
    %79 = tpu.reciprocal %78 {approx = true} : vector<32x256xf32> -> vector<32x256xf32>
    %80 = arith.mulf %73, %79 : vector<32x256xf32>
    %c0_43 = arith.constant 0 : index
    %c0_44 = arith.constant 0 : index
    %c0_45 = arith.constant 0 : index
    %81 = vector.load %arg8[%c0_43, %c0_44, %c0_45] : memref<1x1x256xf32, #tpu.memory_space<vmem>>, vector<1x1x256xf32>
    %82 = vector.shape_cast %81 : vector<1x1x256xf32> to vector<1x256xf32>
    %c0_46 = arith.constant 0 : index
    %c0_47 = arith.constant 0 : index
    %c0_48 = arith.constant 0 : index
    %83 = vector.load %arg9[%c0_46, %c0_47, %c0_48] : memref<1x1x256xf32, #tpu.memory_space<vmem>>, vector<1x1x256xf32>
    %84 = vector.shape_cast %83 : vector<1x1x256xf32> to vector<1x256xf32>
    %cst_49 = arith.constant dense<0.000000e+00> : vector<256xf32>
    %85 = vector.multi_reduction <add>, %80, %cst_49 [0] : vector<32x256xf32> to vector<256xf32>
    %86 = vector.shape_cast %85 : vector<256xf32> to vector<1x256xf32>
    %87 = arith.mulf %80, %80 : vector<32x256xf32>
    %cst_50 = arith.constant dense<0.000000e+00> : vector<256xf32>
    %88 = vector.multi_reduction <add>, %87, %cst_50 [0] : vector<32x256xf32> to vector<256xf32>
    %89 = vector.shape_cast %88 : vector<256xf32> to vector<1x256xf32>
    %cst_51 = arith.constant dense<0.000000e+00> : vector<1x256xf32>
    %90 = tpu.matmul %86, %5, %cst_51 {dimension_numbers = #tpu.dot_dimension_numbers<[1], [0], [0], [1], [0, 0, 1, 1], [], []>} : vector<1x256xf32>, vector<256x256xf32>, vector<1x256xf32> -> vector<1x256xf32>
    %cst_52 = arith.constant 0.001953125 : f32
    %91 = vector.broadcast %cst_52 : f32 to vector<1x256xf32>
    %92 = arith.mulf %90, %91 : vector<1x256xf32>
    %cst_53 = arith.constant dense<0.000000e+00> : vector<1x256xf32>
    %93 = tpu.matmul %89, %5, %cst_53 {dimension_numbers = #tpu.dot_dimension_numbers<[1], [0], [0], [1], [0, 0, 1, 1], [], []>} : vector<1x256xf32>, vector<256x256xf32>, vector<1x256xf32> -> vector<1x256xf32>
    %cst_54 = arith.constant 0.001953125 : f32
    %94 = vector.broadcast %cst_54 : f32 to vector<1x256xf32>
    %95 = arith.mulf %93, %94 : vector<1x256xf32>
    %96 = arith.mulf %92, %92 : vector<1x256xf32>
    %97 = arith.subf %95, %96 : vector<1x256xf32>
    %cst_55 = arith.constant 0.000000e+00 : f32
    %98 = vector.broadcast %cst_55 : f32 to vector<1x256xf32>
    %99 = arith.maximumf %97, %98 : vector<1x256xf32>
    %100 = vector.broadcast %92 : vector<1x256xf32> to vector<32x256xf32>
    %101 = arith.subf %80, %100 : vector<32x256xf32>
    %cst_56 = arith.constant 9.99999974E-6 : f32
    %102 = vector.broadcast %cst_56 : f32 to vector<1x256xf32>
    %103 = arith.addf %99, %102 : vector<1x256xf32>
    %104 = math.rsqrt %103 : vector<1x256xf32>
    %105 = vector.broadcast %104 : vector<1x256xf32> to vector<32x256xf32>
    %106 = arith.mulf %101, %105 : vector<32x256xf32>
    %107 = vector.broadcast %82 : vector<1x256xf32> to vector<32x256xf32>
    %108 = arith.mulf %106, %107 : vector<32x256xf32>
    %109 = vector.broadcast %84 : vector<1x256xf32> to vector<32x256xf32>
    %110 = arith.addf %108, %109 : vector<32x256xf32>
    %111 = arith.truncf %110 : vector<32x256xf32> to vector<32x256xbf16>
    %112 = vector.shape_cast %111 : vector<32x256xbf16> to vector<2x16x256xbf16>
    %c0_57 = arith.constant 0 : index
    %c0_58 = arith.constant 0 : index
    %c0_59 = arith.constant 0 : index
    %c0_60 = arith.constant 0 : index
    %113 = vector.load %arg10[%c0_57, %c0_58, %c0_59, %c0_60] : memref<1x3x256x256xbf16, #tpu.memory_space<vmem>>, vector<1x1x256x256xbf16>
    %114 = vector.shape_cast %113 : vector<1x1x256x256xbf16> to vector<256x256xbf16>
    %c0_61 = arith.constant 0 : index
    %c1_62 = arith.constant 1 : index
    %c0_63 = arith.constant 0 : index
    %c0_64 = arith.constant 0 : index
    %115 = vector.load %arg10[%c0_61, %c1_62, %c0_63, %c0_64] : memref<1x3x256x256xbf16, #tpu.memory_space<vmem>>, vector<1x1x256x256xbf16>
    %116 = vector.shape_cast %115 : vector<1x1x256x256xbf16> to vector<256x256xbf16>
    %c0_65 = arith.constant 0 : index
    %c2_66 = arith.constant 2 : index
    %c0_67 = arith.constant 0 : index
    %c0_68 = arith.constant 0 : index
    %117 = vector.load %arg10[%c0_65, %c2_66, %c0_67, %c0_68] : memref<1x3x256x256xbf16, #tpu.memory_space<vmem>>, vector<1x1x256x256xbf16>
    %118 = vector.shape_cast %117 : vector<1x1x256x256xbf16> to vector<256x256xbf16>
    %c0_69 = arith.constant 0 : index
    %c0_70 = arith.constant 0 : index
    %c0_71 = arith.constant 0 : index
    %119 = vector.load %arg11[%c0_69, %c0_70, %c0_71] : memref<1x1x256xf32, #tpu.memory_space<vmem>>, vector<1x1x256xf32>
    %120 = vector.shape_cast %119 : vector<1x1x256xf32> to vector<1x256xf32>
    %121 = vector.shape_cast %112 : vector<2x16x256xbf16> to vector<32x256xbf16>
    %cst_72 = arith.constant dense<0.000000e+00> : vector<32x256xf32>
    %122 = tpu.matmul %121, %116, %cst_72 {dimension_numbers = #tpu.dot_dimension_numbers<[1], [0], [0], [1], [0, 0, 1, 1], [], []>} : vector<32x256xbf16>, vector<256x256xbf16>, vector<32x256xf32> -> vector<32x256xf32>
    %cst_73 = arith.constant 0.000000e+00 : bf16
    %123 = vector.broadcast %cst_73 : bf16 to vector<2x1x256xbf16>
    %124 = vector.extract_strided_slice %112 {offsets = [0, 0, 0], sizes = [2, 15, 256], strides = [1, 1, 1]} : vector<2x16x256xbf16> to vector<2x15x256xbf16>
    %125 = tpu.concatenate %123, %124 in 1 : vector<2x1x256xbf16>, vector<2x15x256xbf16> -> vector<2x16x256xbf16>
    %126 = vector.shape_cast %125 : vector<2x16x256xbf16> to vector<32x256xbf16>
    %127 = vector.extract_strided_slice %112 {offsets = [0, 1, 0], sizes = [2, 15, 256], strides = [1, 1, 1]} : vector<2x16x256xbf16> to vector<2x15x256xbf16>
    %128 = tpu.concatenate %127, %123 in 1 : vector<2x15x256xbf16>, vector<2x1x256xbf16> -> vector<2x16x256xbf16>
    %129 = vector.shape_cast %128 : vector<2x16x256xbf16> to vector<32x256xbf16>
    %cst_74 = arith.constant dense<0.000000e+00> : vector<32x256xf32>
    %130 = tpu.matmul %126, %114, %cst_74 {dimension_numbers = #tpu.dot_dimension_numbers<[1], [0], [0], [1], [0, 0, 1, 1], [], []>} : vector<32x256xbf16>, vector<256x256xbf16>, vector<32x256xf32> -> vector<32x256xf32>
    %131 = arith.addf %122, %130 : vector<32x256xf32>
    %cst_75 = arith.constant dense<0.000000e+00> : vector<32x256xf32>
    %132 = tpu.matmul %129, %118, %cst_75 {dimension_numbers = #tpu.dot_dimension_numbers<[1], [0], [0], [1], [0, 0, 1, 1], [], []>} : vector<32x256xbf16>, vector<256x256xbf16>, vector<32x256xf32> -> vector<32x256xf32>
    %133 = arith.addf %131, %132 : vector<32x256xf32>
    %134 = vector.broadcast %120 : vector<1x256xf32> to vector<32x256xf32>
    %135 = arith.addf %133, %134 : vector<32x256xf32>
    %136 = arith.addf %4, %135 : vector<32x256xf32>
    %137 = vector.shape_cast %136 : vector<32x256xf32> to vector<2x16x256xf32>
    %c0_76 = arith.constant 0 : index
    %c0_77 = arith.constant 0 : index
    %c0_78 = arith.constant 0 : index
    %138 = vector.load %arg13[%c0_76, %c0_77, %c0_78] : memref<2x16x256xf32, #tpu.memory_space<vmem>>, vector<2x16x256xf32>
    tpu.vector_store %arg13[%c0_76, %c0_77, %c0_78], %137 {strides = array<i32>} : memref<2x16x256xf32, #tpu.memory_space<vmem>>, vector<2x16x256xf32>,
    %c1_i32 = arith.constant 1 : i32
    %139 = arith.cmpi eq, %arg0, %c1_i32 : i32
    %140 = arith.extui %139 : i1 to i32
    %c0_i32_79 = arith.constant 0 : i32
    %141 = arith.cmpi ne, %140, %c0_i32_79 : i32
    scf.if %141 {
      %c0_80 = arith.constant 0 : index
      %c0_81 = arith.constant 0 : index
      %c0_82 = arith.constant 0 : index
      %142 = vector.load %arg12[%c0_80, %c0_81, %c0_82] : memref<2x16x256xf32, #tpu.memory_space<vmem>>, vector<2x16x256xf32>
      tpu.vector_store %arg12[%c0_80, %c0_81, %c0_82], %137 {strides = array<i32>} : memref<2x16x256xf32, #tpu.memory_space<vmem>>, vector<2x16x256xf32>,
    } else {
    }
    return
  }
  func.func @transform_0(%arg0: i32) -> (i32, i32, i32) {
    %c0_i32 = arith.constant 0 : i32
    %c0_i32_0 = arith.constant 0 : i32
    %c0_i32_1 = arith.constant 0 : i32
    %c0_i32_2 = arith.constant 0 : i32
    return %c0_i32, %c0_i32_0, %c0_i32_1 : i32, i32, i32
  }
  func.func @transform_1(%arg0: i32) -> (i32, i32) {
    %c0_i32 = arith.constant 0 : i32
    %c0_i32_0 = arith.constant 0 : i32
    %c0_i32_1 = arith.constant 0 : i32
    return %c0_i32, %c0_i32_0 : i32, i32
  }
  func.func @transform_2(%arg0: i32) -> (i32, i32, i32, i32) {
    %c0_i32 = arith.constant 0 : i32
    %c0_i32_0 = arith.constant 0 : i32
    %c0_i32_1 = arith.constant 0 : i32
    %c0_i32_2 = arith.constant 0 : i32
    return %arg0, %c0_i32, %c0_i32_0, %c0_i32_1 : i32, i32, i32, i32
  }
  func.func @transform_3(%arg0: i32) -> (i32, i32, i32) {
    %c0_i32 = arith.constant 0 : i32
    %c0_i32_0 = arith.constant 0 : i32
    %c0_i32_1 = arith.constant 0 : i32
    return %arg0, %c0_i32, %c0_i32_0 : i32, i32, i32
  }
  func.func @transform_4(%arg0: i32) -> (i32, i32, i32) {
    %c0_i32 = arith.constant 0 : i32
    %c0_i32_0 = arith.constant 0 : i32
    %c0_i32_1 = arith.constant 0 : i32
    return %arg0, %c0_i32, %c0_i32_0 : i32, i32, i32
  }
  func.func @transform_5(%arg0: i32) -> (i32, i32, i32, i32) {
    %c0_i32 = arith.constant 0 : i32
    %c0_i32_0 = arith.constant 0 : i32
    %c0_i32_1 = arith.constant 0 : i32
    %c0_i32_2 = arith.constant 0 : i32
    return %arg0, %c0_i32, %c0_i32_0, %c0_i32_1 : i32, i32, i32, i32
  }
  func.func @transform_6(%arg0: i32) -> (i32, i32, i32) {
    %c0_i32 = arith.constant 0 : i32
    %c0_i32_0 = arith.constant 0 : i32
    %c0_i32_1 = arith.constant 0 : i32
    return %arg0, %c0_i32, %c0_i32_0 : i32, i32, i32
  }
  func.func @transform_7(%arg0: i32) -> (i32, i32, i32) {
    %c0_i32 = arith.constant 0 : i32
    %c0_i32_0 = arith.constant 0 : i32
    %c0_i32_1 = arith.constant 0 : i32
    return %arg0, %c0_i32, %c0_i32_0 : i32, i32, i32
  }
  func.func @transform_8(%arg0: i32) -> (i32, i32, i32) {
    %c0_i32 = arith.constant 0 : i32
    %c0_i32_0 = arith.constant 0 : i32
    %c0_i32_1 = arith.constant 0 : i32
    return %arg0, %c0_i32, %c0_i32_0 : i32, i32, i32
  }
  func.func @transform_9(%arg0: i32) -> (i32, i32, i32, i32) {
    %c0_i32 = arith.constant 0 : i32
    %c0_i32_0 = arith.constant 0 : i32
    %c0_i32_1 = arith.constant 0 : i32
    %c0_i32_2 = arith.constant 0 : i32
    return %arg0, %c0_i32, %c0_i32_0, %c0_i32_1 : i32, i32, i32, i32
  }
  func.func @transform_10(%arg0: i32) -> (i32, i32, i32) {
    %c0_i32 = arith.constant 0 : i32
    %c0_i32_0 = arith.constant 0 : i32
    %c0_i32_1 = arith.constant 0 : i32
    return %arg0, %c0_i32, %c0_i32_0 : i32, i32, i32
  }
  func.func @transform_11(%arg0: i32) -> (i32, i32, i32) {
    %c0_i32 = arith.constant 0 : i32
    %c0_i32_0 = arith.constant 0 : i32
    %c0_i32_1 = arith.constant 0 : i32
    %c0_i32_2 = arith.constant 0 : i32
    return %c0_i32, %c0_i32_0, %c0_i32_1 : i32, i32, i32
  }
}

</mosaic_0001>

<bundles_post_ra>
// kernel: decoder_forward.2
= control target key start
LH: loop header
LB: loop body
LE: loop exit
PB: predicated region body
PF: predicated region fallthrough
CT: control target
= control target key end

     0   :  { %vm43_vm0 = vcmask 130048   ;;  %vm133_vm1 = vcmask 523264   ;;  %v926_v44 = vmov 0   ;;  %vm258_vm2 = vcmask 1040384   ;;  %s1168_s0 = inlined_call_operand.vmem [shape: bf16[16,64], index: 0, kind: input, shape index: {}]   ;;  %s1169_s1 = inlined_call_operand.vmem [shape: bf16[32,16], index: 1, kind: input, shape index: {}]   ;;  %s1170_s2 = inlined_call_operand.vmem [shape: bf16[64,128], index: 2, kind: input, shape index: {}]   ;;  %s1171_s3 = inlined_call_operand.vmem [shape: bf16[3,128,256], index: 3, kind: input, shape index: {}]   ;;  %s1172_s4 = inlined_call_operand.vmem [shape: f32[1,256], index: 4, kind: input, shape index: {}]   ;;  %s1173_s5 = inlined_call_operand.vmem [shape: f32[2,16,256], index: 5, kind: output, shape index: {}]  }
   0x1   :  { %v847_v0 = vld [vmem:[%s1168_s0] sm:$0xff]   ;;  %v849_v2 = vld [vmem:[%s1169_s1 + $0x8] sm:$0xff]   ;;  %v852_v5 = vld [vmem:[%s1170_s2 + $0x10] sm:$0xff]   ;;  %519 = vmatprep.mubr.bf16.mxu0 %v926_v44  ;;  %vm259_vm3 = vsmask.f32 256  ;;  %vm269_vm5 = vcmask 1047552  }
   0x2   :  { %v848_v1 = vld [vmem:[%s1169_s1] sm:$0xff]   ;;  %812 = vmatprep.subr.bf16.mxu1 %v847_v0  ;;  %v851_v4 = vld [vmem:[%s1170_s2 + $0x8] sm:$0xff]   ;;  %v853_v6 = vld [vmem:[%s1170_s2 + $0x18] sm:$0xff]   ;;  %vm270_vm6 = vsmask.f32 7424 }
   0x3   :  { %813 = vmatpush3.bf16.msra.mxu1 %v847_v0  ;;  %814 = vmatprep.mubr.msk.bf16.mxu1 %vm43_vm0, %v848_v1  ;;  %v850_v3 = vld [vmem:[%s1170_s2] sm:$0xff]   ;;  %v857_v9 = vld [vmem:[%s1171_s3 + $0x94] ss:$8 sps:$4 sm:$0xff]   ;;  %v859_v10 = vld [vmem:[%s1171_s3 + $0x90] ss:$8 sps:$4 sm:$0xff]  }
   0x4   :  { %818 = vmatprep.subr.bf16.mxu1 %v850_v3  ;;  %v854_v7 = vld [vmem:[%s1171_s3 + $0x84] ss:$8 sps:$4 sm:$0xff]   ;;  %v856_v8 = vld [vmem:[%s1171_s3 + $0x80] ss:$8 sps:$4 sm:$0xff]   ;;  %v869_v14 = vld [vmem:[%s1171_s3 + $0xb4] ss:$8 sps:$4 sm:$0xff]  }
   0x5   :  { %487 = vmatprep.subr.bf16.mxu0 %v854_v7  ;;  %v862_v11 = vld [vmem:[%s1171_s3 + $0x4] ss:$8 sps:$4 sm:$0xff]   ;;  %v865_v13 = vld [vmem:[%s1171_s3 + $0xa0] ss:$8 sps:$4 sm:$0xff]   ;;  %v871_v15 = vld [vmem:[%s1171_s3 + $0xb0] ss:$8 sps:$4 sm:$0xff]  }
   0x6   :  { %815 = vmatmul.mubr.msk.bf16.vlgmr.msra.gmra.mrb[0].mxu1 %vm43_vm0, %v849_v2  ;;  %488 = vmatpush1.bf16.msra.mxu0 %v856_v8  ;;  %v863_v12 = vld [vmem:[%s1171_s3 + $0xa4] ss:$8 sps:$4 sm:$0xff]   ;;  %v877_v17 = vld [vmem:[%s1171_s3 + $0xc0] ss:$8 sps:$4 sm:$0xff]   ;;  %v881_v18 = vld [vmem:[%s1171_s3 + $0xd4] ss:$8 sps:$4 sm:$0xff]  }
   0x7   :  { %819 = vmatpush3.bf16.msra.mxu1 %v850_v3  ;;  %489 = vmatprep.subr.bf16.mxu0 %v857_v9  ;;  %v875_v16 = vld [vmem:[%s1171_s3 + $0xc4] ss:$8 sps:$4 sm:$0xff]   ;;  %v883_v19 = vld [vmem:[%s1171_s3 + $0xd0] ss:$8 sps:$4 sm:$0xff]   ;;  %v889_v21 = vld [vmem:[%s1171_s3 + $0xe0] ss:$8 sps:$4 sm:$0xff]  }
   0x8   :  { %820 = vmatprep.subr.bf16.mxu1 %v851_v4  ;;  %v887_v20 = vld [vmem:[%s1171_s3 + $0xe4] ss:$8 sps:$4 sm:$0xff]   ;;  %v860_v28 = vld [vmem:[%s1171_s3] ss:$8 sps:$4 sm:$0xff]   ;;  %v868_v29 = vld [vmem:[%s1171_s3 + $0x14] ss:$8 sps:$4 sm:$0xff]  }
   0x9   :  { %v866_v30 = vld [vmem:[%s1171_s3 + $0x10] ss:$8 sps:$4 sm:$0xff]   ;;  %v874_v31 = vld [vmem:[%s1171_s3 + $0x24] ss:$8 sps:$4 sm:$0xff]   ;;  %v872_v32 = vld [vmem:[%s1171_s3 + $0x20] ss:$8 sps:$4 sm:$0xff]  }
   0xa   :  { %490 = vmatpush1.bf16.msra.mxu0 %v859_v10  ;;  %v880_v33 = vld [vmem:[%s1171_s3 + $0x34] ss:$8 sps:$4 sm:$0xff]   ;;  %v878_v34 = vld [vmem:[%s1171_s3 + $0x30] ss:$8 sps:$4 sm:$0xff]   ;;  %v886_v35 = vld [vmem:[%s1171_s3 + $0x44] ss:$8 sps:$4 sm:$0xff]  }
   0xb   :  { %821 = vmatpush3.bf16.msra.mxu1 %v851_v4  ;;  %491 = vmatprep.subr.bf16.mxu0 %v863_v12  ;;  %v884_v36 = vld [vmem:[%s1171_s3 + $0x40] ss:$8 sps:$4 sm:$0xff]   ;;  %v892_v37 = vld [vmem:[%s1171_s3 + $0x54] ss:$8 sps:$4 sm:$0xff]   ;;  %v890_v39 = vld [vmem:[%s1171_s3 + $0x50] ss:$8 sps:$4 sm:$0xff]  }
   0xc   :  { %822 = vmatprep.subr.bf16.mxu1 %v852_v5  ;;  %v893_v38 = vld [vmem:[%s1171_s3 + $0xf4] ss:$8 sps:$4 sm:$0xff]   ;;  %v895_v40 = vld [vmem:[%s1171_s3 + $0xf0] ss:$8 sps:$4 sm:$0xff]   ;;  %v898_v41 = vld [vmem:[%s1171_s3 + $0x64] ss:$8 sps:$4 sm:$0xff]  }
   0xd   :  { %v901_v42 = vld [vmem:[%s1171_s3 + $0x104] ss:$8 sps:$4 sm:$0xff]   ;;  %v896_v43 = vld [vmem:[%s1171_s3 + $0x60] ss:$8 sps:$4 sm:$0xff]   ;;  %v904_v45 = vld [vmem:[%s1171_s3 + $0x74] ss:$8 sps:$4 sm:$0xff]  }
   0xe   :  { %492 = vmatpush1.bf16.msra.mxu0 %v865_v13  ;;  %v902_v46 = vld [vmem:[%s1171_s3 + $0x70] ss:$8 sps:$4 sm:$0xff]   ;;  %v899_v52 = vld [vmem:[%s1171_s3 + $0x100] ss:$8 sps:$4 sm:$0xff]   ;;  %v907_v54 = vld [vmem:[%s1171_s3 + $0x114] ss:$8 sps:$4 sm:$0xff]  }
   0xf   :  { %823 = vmatpush3.bf16.msra.mxu1 %v852_v5  ;;  %493 = vmatprep.subr.bf16.mxu0 %v869_v14  ;;  %v905_v56 = vld [vmem:[%s1171_s3 + $0x110] ss:$8 sps:$4 sm:$0xff]   ;;  %v910_v60 = vld [vmem:[%s1171_s3 + $0x124] ss:$8 sps:$4 sm:$0xff]   ;;  %vm1095_vm4 = vmand %vm258_vm2, %vm259_vm3 }
  0x10   :  { %824 = vmatprep.subr.bf16.mxu1 %v853_v6  ;;  %v908_v63 = vld [vmem:[%s1171_s3 + $0x120] ss:$8 sps:$4 sm:$0xff]   ;;  %v913_v1 = vld [vmem:[%s1171_s3 + $0x134] ss:$8 sps:$4 sm:$0xff]   ;;  %v911_v4 = vld [vmem:[%s1171_s3 + $0x130] ss:$8 sps:$4 sm:$0xff]  }
  0x11   :  { %v914_v7 = vld [vmem:[%s1171_s3 + $0x140] ss:$8 sps:$4 sm:$0xff]   ;;  %v919_v9 = vld [vmem:[%s1171_s3 + $0x154] ss:$8 sps:$4 sm:$0xff]   ;;  %v917_v10 = vld [vmem:[%s1171_s3 + $0x150] ss:$8 sps:$4 sm:$0xff]  }
  0x12   :  { %494 = vmatpush1.bf16.msra.mxu0 %v871_v15  ;;  %v920_v12 = vld [vmem:[%s1171_s3 + $0x160] ss:$8 sps:$4 sm:$0xff]   ;;  %v925_v13 = vld [vmem:[%s1171_s3 + $0x174] ss:$8 sps:$4 sm:$0xff]   ;;  %v923_v15 = vld [vmem:[%s1171_s3 + $0x170] ss:$8 sps:$4 sm:$0xff]  }
  0x13   :  { %825 = vmatpush3.bf16.msra.mxu1 %v853_v6  ;;  %495 = vmatprep.subr.bf16.mxu0 %v875_v16  ;;  %v916_v6 = vld [vmem:[%s1171_s3 + $0x144] ss:$8 sps:$4 sm:$0xff]   ;;  %vm271_vm7 = vmand %vm269_vm5, %vm270_vm6 }
  0x14   :  { %354 = vmatprep.subr.bf16.mxu1 %v862_v11  ;;  %v922_v11 = vld [vmem:[%s1171_s3 + $0x164] ss:$8 sps:$4 sm:$0xff]  }
  0x16   :  { %496 = vmatpush1.bf16.msra.mxu0 %v877_v17 }
  0x17   :  { %497 = vmatprep.subr.bf16.mxu0 %v881_v18 }
  0x1a   :  { %498 = vmatpush1.bf16.msra.mxu0 %v883_v19 }
  0x1b   :  { %499 = vmatprep.subr.bf16.mxu0 %v887_v20 }
  0x1e   :  { %500 = vmatpush1.bf16.msra.mxu0 %v889_v21 }
  0x1f   :  { %501 = vmatprep.subr.bf16.mxu0 %v893_v38 }
  0x22   :  { %502 = vmatpush1.bf16.msra.mxu0 %v895_v40 }
  0x23   :  { %620 = vmatprep.subr.bf16.mxu0 %v901_v42 }
  0xd9   :  { %v816_v22 = vpop.f32.mrb[0].mxu1 }
  0xda   :  { %v84_v23 = vpop.f32.mrb[1].mxu1 }
  0xdb   :  { %v817_v24 = vpop.f32.mrb[2].mxu1 }
  0xdc   :  { %v100_v25 = vpack.c.bf16 %v817_v24, %v816_v22  ;;  %v87_v26 = vpop.f32.mrb[3].mxu1 }
  0xdd   :  { %v99_v27 = vpack.c.bf16 %v87_v26, %v84_v23 }
  0xdf   :  { %826 = vmatprep.mubr.msk.bf16.mxu1 %vm133_vm1, %v99_v27 }
  0xe0   :  { %827 = vmatmul.mubr.msk.bf16.vlgmr.msra.gmra.mrb[4].mxu1 %vm133_vm1, %v100_v25 }
  0xe1   :  { %355 = vmatpush1.bf16.msra.mxu1 %v860_v28  ;;  %386 = vmatprep.mubr.bf16.mxu1 %v926_v44 }
  0xe2   :  { %356 = vmatprep.subr.bf16.mxu1 %v868_v29  ;;  %v682_v29 = vlaneseq }
  0xe5   :  { %357 = vmatpush1.bf16.msra.mxu1 %v866_v30  ;;  %v683_v30 = vshrl.u32 %v682_v29, 7 }
  0xe6   :  { %358 = vmatprep.subr.bf16.mxu1 %v874_v31 }
  0xe7   :  { %v684_v31 = vsub.s32 0, %v683_v30 }
  0xe9   :  { %359 = vmatpush1.bf16.msra.mxu1 %v872_v32  ;;  %v241_v32 = vld [vmem:[%s1172_s4] sm:$0x3] }
  0xea   :  { %360 = vmatprep.subr.bf16.mxu1 %v880_v33  ;;  %v688_v33 = vsub.s32 1, %v683_v30 }
  0xed   :  { %361 = vmatpush1.bf16.msra.mxu1 %v878_v34  ;;  %v685_v34 = vrot.slane %v241_v32, %v684_v31 }
  0xee   :  { %362 = vmatprep.subr.bf16.mxu1 %v886_v35 }
  0xf1   :  { %363 = vmatpush1.bf16.msra.mxu1 %v884_v36  ;;  %v689_v36 = vrot.slane %v241_v32, %v688_v33 }
  0xf2   :  { %364 = vmatprep.subr.bf16.mxu1 %v892_v37 }
  0xf5   :  { %365 = vmatpush1.bf16.msra.mxu1 %v890_v39 }
  0xf6   :  { %366 = vmatprep.subr.bf16.mxu1 %v898_v41 }
  0xf9   :  { %367 = vmatpush1.bf16.msra.mxu1 %v896_v43 }
  0xfa   :  { %368 = vmatprep.subr.bf16.mxu1 %v904_v45 }
  0xfd   :  { %369 = vmatpush1.bf16.msra.mxu1 %v902_v46 }
 0x1b3   :  { %v828_v47 = vpop.f32.mrb[4].mxu1 }
 0x1b4   :  { %v174_v48 = vpop.f32.mrb[5].mxu1 }
 0x1b5   :  { %v829_v49 = vpop.f32.mrb[6].mxu1 }
 0x1b6   :  { %v1079_v50 = vpack.c.bf16 %v829_v49, %v828_v47  ;;  %v177_v51 = vpop.f32.mrb[7].mxu1 }
 0x1b7   :  { %v189_v53 = vpack.c.bf16 %v177_v51, %v174_v48 }
 0x1b8   :  { %v250_v57 = vshrl.u32 %v1079_v50, 16  ;;  %v253_v3 = vshll.u32 %v1079_v50, 16 }
 0x1b9   :  { %v243_v55 = vshrl.u32 %v189_v53, 16  ;;  %520 = vmatmul.mubr.bf16.vlgmr.msra.gmra.mrb[0].mxu0 %v189_v53  ;;  %v246_v59 = vshll.u32 %v189_v53, 16 }
 0x1ba   :  { %621 = vmatpush1.bf16.msra.mxu0 %v899_v52  ;;  %529 = vmatprep.mubr.bf16.mxu0 %v926_v44  ;;  %v252_v2 = vrot.slane %v250_v57, 7  ;;  %v265_v18 = vrot.slane %v253_v3, 1 }
 0x1bb   :  { %v245_v58 = vrot.slane %v243_v55, 7  ;;  %622 = vmatprep.subr.bf16.mxu0 %v907_v54  ;;  %v263_v14 = vrot.slane %v246_v59, 1 }
 0x1bc   :  { %v255_v5 = vor.u32 %v253_v3, %v252_v2  ;;  %v266_v19 = vor.u32 %v265_v18, %v250_v57 }
 0x1bd   :  { %v248_v62 = vor.u32 %v246_v59, %v245_v58  ;;  %v264_v16 = vor.u32 %v263_v14, %v243_v55 }
 0x1be   :  { %623 = vmatpush1.bf16.msra.mxu0 %v905_v56  ;;  %v262_v8 = vsel %vm1095_vm4, 0, %v255_v5  ;;  %v273_v20 = vsel %vm271_vm7, %v266_v19, 0 }
 0x1bf   :  { %v261_v0 = vsel %vm1095_vm4, 0, %v248_v62  ;;  %624 = vmatprep.subr.bf16.mxu0 %v910_v60  ;;  %v272_v17 = vsel %vm271_vm7, %v264_v16, 0 }
 0x1c0   :  { %387 = vmatmul.mubr.bf16.vlgmr.msra.gmra.mrb[8].mxu1 %v261_v0 }
 0x1c1   :  { %530 = vmatmul.mubr.bf16.gmra.mrb[4].mxu0 %v1079_v50  ;;  %396 = vmatprep.mubr.bf16.mxu1 %v926_v44 }
 0x1c2   :  { %625 = vmatpush1.bf16.msra.mxu0 %v908_v63  ;;  %652 = vmatprep.mubr.bf16.mxu0 %v926_v44 }
 0x1c3   :  { %626 = vmatprep.subr.bf16.mxu0 %v913_v1 }
 0x1c6   :  { %627 = vmatpush1.bf16.msra.mxu0 %v911_v4 }
 0x1c7   :  { %628 = vmatprep.subr.bf16.mxu0 %v916_v6 }
 0x1c8   :  { %397 = vmatmul.mubr.bf16.gmra.mrb[12].mxu1 %v262_v8 }
 0x1ca   :  { %629 = vmatpush1.bf16.msra.mxu0 %v914_v7 }
 0x1cb   :  { %630 = vmatprep.subr.bf16.mxu0 %v919_v9 }
 0x1ce   :  { %631 = vmatpush1.bf16.msra.mxu0 %v917_v10 }
 0x1cf   :  { %632 = vmatprep.subr.bf16.mxu0 %v922_v11 }
 0x1d2   :  { %633 = vmatpush1.bf16.msra.mxu0 %v920_v12 }
 0x1d3   :  { %634 = vmatprep.subr.bf16.mxu0 %v925_v13 }
 0x1d6   :  { %635 = vmatpush1.bf16.msra.mxu0 %v923_v15 }
 0x1d9   :  { %653 = vmatmul.mubr.bf16.vlgmr.msra.gmra.mrb[0].mxu0 %v272_v17 }
 0x1da   :  { %662 = vmatprep.mubr.bf16.mxu0 %v926_v44 }
 0x1e1   :  { %663 = vmatmul.mubr.bf16.gmra.mrb[4].mxu0 %v273_v20 }
 0x293   :  { %v388_v21 = vpop.f32.mrb[8].mxu1 }
 0x294   :  { %v390_v22 = vpop.f32.mrb[9].mxu1 }
 0x295   :  { %v392_v23 = vpop.f32.mrb[10].mxu1 }
 0x296   :  { %v394_v24 = vpop.f32.mrb[11].mxu1 }
 0x29b   :  { %v398_v25 = vpop.f32.mrb[12].mxu1 }
 0x29c   :  { %v400_v26 = vpop.f32.mrb[13].mxu1 }
 0x29d   :  { %v402_v27 = vpop.f32.mrb[14].mxu1 }
 0x29e   :  { %v404_v28 = vpop.f32.mrb[15].mxu1 }
 0x2ac   :  { %v654_v35 = vpop.f32.mrb[0].mxu0 }
 0x2ad   :  { %v830_v37 = vadd.f32 %v654_v35, %v388_v21  ;;  %v656_v38 = vpop.f32.mrb[1].mxu0 }
 0x2ae   :  { %v831_v39 = vadd.f32 %v656_v38, %v390_v22  ;;  %v658_v40 = vpop.f32.mrb[2].mxu0 }
 0x2af   :  { %v692_v41 = vadd.f32 %v830_v37, %v685_v34  ;;  %v832_v42 = vadd.f32 %v658_v40, %v392_v23  ;;  %v660_v43 = vpop.f32.mrb[3].mxu0 }
 0x2b0   :  { %v693_v44 = vadd.f32 %v831_v39, %v689_v36  ;;  %v833_v45 = vadd.f32 %v660_v43, %v394_v24 }
 0x2b1   :  { %700 = vst [vmem:[%s1173_s5] sm:$0xff] %v692_v41  ;;  %v694_v46 = vadd.f32 %v832_v42, %v685_v34 }
 0x2b2   :  { %701 = vst [vmem:[%s1173_s5 + $0x8] sm:$0xff] %v693_v44  ;;  %v695_v47 = vadd.f32 %v833_v45, %v689_v36 }
 0x2b3   :  { %702 = vst [vmem:[%s1173_s5 + $0x10] sm:$0xff] %v694_v46 }
 0x2b4   :  { %703 = vst [vmem:[%s1173_s5 + $0x18] sm:$0xff] %v695_v47  ;;  %v664_v48 = vpop.f32.mrb[4].mxu0 }
 0x2b5   :  { %v834_v49 = vadd.f32 %v664_v48, %v398_v25  ;;  %v666_v50 = vpop.f32.mrb[5].mxu0 }
 0x2b6   :  { %v835_v51 = vadd.f32 %v666_v50, %v400_v26  ;;  %v668_v52 = vpop.f32.mrb[6].mxu0 }
 0x2b7   :  { %v696_v53 = vadd.f32 %v834_v49, %v685_v34  ;;  %v836_v54 = vadd.f32 %v668_v52, %v402_v27  ;;  %v670_v55 = vpop.f32.mrb[7].mxu0 }
 0x2b8   :  { %v697_v56 = vadd.f32 %v835_v51, %v689_v36  ;;  %v837_v57 = vadd.f32 %v670_v55, %v404_v28 }
 0x2b9   :  { %704 = vst [vmem:[%s1173_s5 + $0x20] sm:$0xff] %v696_v53  ;;  %v698_v58 = vadd.f32 %v836_v54, %v685_v34 }
 0x2ba   :  { %705 = vst [vmem:[%s1173_s5 + $0x28] sm:$0xff] %v697_v56  ;;  %v699_v59 = vadd.f32 %v837_v57, %v689_v36 }
 0x2bb   :  { %706 = vst [vmem:[%s1173_s5 + $0x30] sm:$0xff] %v698_v58 }
 0x2bc   :  { %707 = vst [vmem:[%s1173_s5 + $0x38] sm:$0xff] %v699_v59 }

// kernel: decoder_forward.3
= control target key start
LH: loop header
LB: loop body
LE: loop exit
PB: predicated region body
PF: predicated region fallthrough
CT: control target
= control target key end

     0   :  { %s4146_s17 = smov 0   ;;  %s5128_s0 = inlined_call_operand.vmem [shape: f32[2,16,256], index: 0, kind: input, shape index: {}]   ;;  %s5129_s1 = inlined_call_operand.vmem [shape: f32[256,256], index: 1, kind: input, shape index: {}]   ;;  %s5130_s2 = inlined_call_operand.vmem [shape: f32[2,2,1,256], index: 2, kind: input, shape index: {}]   ;;  %s5131_s3 = inlined_call_operand.vmem [shape: f32[2,1,256], index: 3, kind: input, shape index: {}]   ;;  %s5132_s4 = inlined_call_operand.vmem [shape: f32[2,1,256], index: 4, kind: input, shape index: {}]   ;;  %s5133_s5 = inlined_call_operand.vmem [shape: bf16[2,3,256,256], index: 5, kind: input, shape index: {}]   ;;  %s5134_s6 = inlined_call_operand.vmem [shape: f32[2,1,256], index: 6, kind: input, shape index: {}]   ;;  %s5135_s7 = inlined_call_operand.vmem [shape: f32[2,1,256], index: 7, kind: input, shape index: {}]   ;;  %s5136_s8 = inlined_call_operand.vmem [shape: f32[2,1,256], index: 8, kind: input, shape index: {}]   ;;  %s5137_s9 = inlined_call_operand.vmem [shape: bf16[2,3,256,256], index: 9, kind: input, shape index: {}]   ;;  %s5138_s10 = inlined_call_operand.vmem [shape: f32[2,1,256], index: 10, kind: input, shape index: {}]   ;;  %s5139_s11 = inlined_call_operand.vmem [shape: f32[2,16,256], index: 11, kind: output, shape index: {}]  }
   0x1   :  { %5144 = sst [smem:[#allocation7_spill]] %s5130_s2 }
   0x2 LB: > { %5145 = sst [smem:[#allocation3_spill]] %s4084_s17  ;;  %s4152_s18 = sadd.s32 4294967295, %s4084_s17   ;;  %s4084_s17 = sphi %s4146_s17, %s21_s17  }
   0x3   : > { %p3079_p0 = scmp.ge.s32.totalorder %s4084_s17, 1  ;;  %p405_p1 = scmp.lt.s32.totalorder %s4084_s17, 3 }
   0x5   : > { %p406_p2 = pnand %p3079_p0, %p405_p1 }
   0x7   : > { %409 = sbr.rel (%p406_p2) target bundleno = 1475 (0x5c3), region = 64 }
   0xe   : > { %p473_p3 = scmp.lt.s32.totalorder %s4152_s18, 1  ;;  %s5146_s2 = sld [smem:[#allocation7_spill]] }
   0xf   : > { %p3089_p4 = scmp.ne.s32.totalorder %s4152_s18, 0 }
  0x10   : > { %s474_s19 = scalar_select %p473_p3, %s4152_s18, 1 }
  0x11   : > { %515 = sbr.rel (%p3089_p4) target bundleno = 24 (0x18), region = 68  ;;  %v516_v0 = vld [vmem:[%s5128_s0] sm:$0xff] (!%p3089_p4)  ;;  %v517_v1 = vld [vmem:[%s5128_s0 + $0x8] sm:$0xff] (!%p3089_p4)  ;;  %v518_v2 = vld [vmem:[%s5128_s0 + $0x10] sm:$0xff] (!%p3089_p4) }
  0x12   : > { %s3080_s20 = sshll.u32 %s474_s19, 2  ;;  %s4158_s21 = sshll.u32 %s474_s19, 1  ;;  %524 = vst [vmem:[#allocation2] sm:$0xff] (!%p3089_p4), %v516_v0  ;;  %525 = vst [vmem:[#allocation2 + $0x8] sm:$0xff] (!%p3089_p4), %v517_v1  ;;  %v519_v3 = vld [vmem:[%s5128_s0 + $0x18] sm:$0xff] (!%p3089_p4)  ;;  %v520_v4 = vld [vmem:[%s5128_s0 + $0x20] sm:$0xff] (!%p3089_p4) }
  0x13   : > { %s484_s30 = scalar_lea.vmem %s5132_s4, %s4158_s21  ;;  %s3701_s12 = smul.u32 768, %s474_s19  ;;  %526 = vst [vmem:[#allocation2 + $0x10] sm:$0xff] (!%p3089_p4), %v518_v2  ;;  %v521_v5 = vld [vmem:[%s5128_s0 + $0x28] sm:$0xff] (!%p3089_p4)  ;;  %527 = vst [vmem:[#allocation2 + $0x18] sm:$0xff] (!%p3089_p4), %v519_v3  ;;  %v522_v6 = vld [vmem:[%s5128_s0 + $0x30] sm:$0xff] (!%p3089_p4) }
  0x14   : > { %s4163_s24 = scalar_lea.vmem %s5146_s2, %s3080_s20  ;;  %s497_s23 = scalar_lea.vmem %s5135_s7, %s4158_s21  ;;  %528 = vst [vmem:[#allocation2 + $0x20] sm:$0xff] (!%p3089_p4), %v520_v4  ;;  %529 = vst [vmem:[#allocation2 + $0x28] sm:$0xff] (!%p3089_p4), %v521_v5  ;;  %v523_v7 = vld [vmem:[%s5128_s0 + $0x38] sm:$0xff] (!%p3089_p4) }
  0x15   : > { %s4184_s2 = scalar_lea.vmem %s5133_s5, %s3701_s12  ;;  %s501_s27 = scalar_lea.vmem %s5136_s8, %s4158_s21  ;;  %530 = vst [vmem:[#allocation2 + $0x30] sm:$0xff] (!%p3089_p4), %v522_v6  ;;  %531 = vst [vmem:[#allocation2 + $0x38] sm:$0xff] (!%p3089_p4), %v523_v7 }
  0x16   : > { %s4193_s19 = scalar_lea.vmem %s5137_s9, %s3701_s12  ;;  %s510_s15 = scalar_lea.vmem %s5138_s10, %s4158_s21 }
  0x18 PF: > { %v541_v8 = vld [vmem:[%s5129_s1 + $0x8] sm:$0xff]  ;;  %v543_v9 = vld [vmem:[%s5129_s1 + $0x18] sm:$0xff]  ;;  %v540_v10 = vld [vmem:[%s5129_s1] sm:$0xff]  ;;  %s5150_s20 = scalar_lea.vmem %s5131_s3, %s4158_s21  ;;  %vm1061_vm0 = vcmask 1040384   ;;  %vm1062_vm1 = vsmask.f32 256 }
  0x19   : > { %v4233_v11 = vpack.c.bf16 %v543_v9, %v541_v8  ;;  %v542_v12 = vld [vmem:[%s5129_s1 + $0x10] sm:$0xff]  ;;  %v545_v13 = vld [vmem:[%s5129_s1 + $0x28] sm:$0xff]  ;;  %v547_v14 = vld [vmem:[%s5129_s1 + $0x38] sm:$0xff]  ;;  %vm1080_vm3 = vcmask 1047552   ;;  %vm1081_vm4 = vsmask.f32 7424 }
  0x1a   : > { %v4244_v15 = vpack.c.bf16 %v542_v12, %v540_v10  ;;  %v4246_v16 = vpack.c.bf16 %v547_v14, %v545_v13  ;;  %v544_v17 = vld [vmem:[%s5129_s1 + $0x20] sm:$0xff]  ;;  %v546_v18 = vld [vmem:[%s5129_s1 + $0x30] sm:$0xff]  ;;  %v549_v19 = vld [vmem:[%s5129_s1 + $0x48] sm:$0xff]  ;;  %p3410_p5 = scmp.ne.s32.totalorder %s4152_s18, 1 }
  0x1b   : > { %3414 = vmatprep.subr.bf16.mxu0 %v4233_v11  ;;  %v551_v20 = vld [vmem:[%s5129_s1 + $0x58] sm:$0xff]  ;;  %3542 = vmatprep.subr.bf16.mxu1 %v4233_v11  ;;  %v4263_v21 = vpack.c.bf16 %v546_v18, %v544_v17  ;;  %v548_v23 = vld [vmem:[%s5129_s1 + $0x40] sm:$0xff]  ;;  %v550_v24 = vld [vmem:[%s5129_s1 + $0x50] sm:$0xff] }
  0x1c   : > { %3416 = vmatpush1.bf16.msra.mxu0 %v4244_v15  ;;  %3544 = vmatpush1.bf16.msra.mxu1 %v4244_v15  ;;  %v4267_v22 = vpack.c.bf16 %v551_v20, %v549_v19  ;;  %v553_v25 = vld [vmem:[%s5129_s1 + $0x68] sm:$0xff]  ;;  %v555_v26 = vld [vmem:[%s5129_s1 + $0x78] sm:$0xff]  ;;  %v4283_v27 = vpack.c.bf16 %v550_v24, %v548_v23  ;;  %v552_v29 = vld [vmem:[%s5129_s1 + $0x60] sm:$0xff] }
  0x1d   : > { %3418 = vmatprep.subr.bf16.mxu0 %v4246_v16  ;;  %3546 = vmatprep.subr.bf16.mxu1 %v4246_v16  ;;  %v4287_v28 = vpack.c.bf16 %v555_v26, %v553_v25  ;;  %v554_v30 = vld [vmem:[%s5129_s1 + $0x70] sm:$0xff]  ;;  %v557_v31 = vld [vmem:[%s5129_s1 + $0x88] sm:$0xff]  ;;  %v559_v32 = vld [vmem:[%s5129_s1 + $0x98] sm:$0xff] }
  0x1e   : > { %v4303_v33 = vpack.c.bf16 %v554_v30, %v552_v29  ;;  %v4307_v34 = vpack.c.bf16 %v559_v32, %v557_v31  ;;  %v556_v35 = vld [vmem:[%s5129_s1 + $0x80] sm:$0xff]  ;;  %v558_v36 = vld [vmem:[%s5129_s1 + $0x90] sm:$0xff]  ;;  %v561_v37 = vld [vmem:[%s5129_s1 + $0xa8] sm:$0xff] }
  0x1f   : > { %v563_v38 = vld [vmem:[%s5129_s1 + $0xb8] sm:$0xff]  ;;  %v4323_v39 = vpack.c.bf16 %v558_v36, %v556_v35  ;;  %v560_v41 = vld [vmem:[%s5129_s1 + $0xa0] sm:$0xff]  ;;  %v562_v42 = vld [vmem:[%s5129_s1 + $0xb0] sm:$0xff] }
  0x20   : > { %3420 = vmatpush1.bf16.msra.mxu0 %v4263_v21  ;;  %3548 = vmatpush1.bf16.msra.mxu1 %v4263_v21  ;;  %v4327_v40 = vpack.c.bf16 %v563_v38, %v561_v37  ;;  %v565_v43 = vld [vmem:[%s5129_s1 + $0xc8] sm:$0xff]  ;;  %v567_v44 = vld [vmem:[%s5129_s1 + $0xd8] sm:$0xff]  ;;  %v4343_v45 = vpack.c.bf16 %v562_v42, %v560_v41  ;;  %v564_v46 = vld [vmem:[%s5129_s1 + $0xc0] sm:$0xff] }
  0x21   : > { %3422 = vmatprep.subr.bf16.mxu0 %v4267_v22  ;;  %3550 = vmatprep.subr.bf16.mxu1 %v4267_v22  ;;  %v566_v47 = vld [vmem:[%s5129_s1 + $0xd0] sm:$0xff]  ;;  %v569_v48 = vld [vmem:[%s5129_s1 + $0xe8] sm:$0xff]  ;;  %v4356_v49 = vpack.c.bf16 %v567_v44, %v565_v43  ;;  %v571_v50 = vld [vmem:[%s5129_s1 + $0xf8] sm:$0xff] }
  0x22   : > { %v4361_v51 = vld [vmem:[#allocation2 + $0x8] sm:$0xff]  ;;  %v4363_v52 = vld [vmem:[#allocation2 + $0x18] sm:$0xff]  ;;  %v4372_v57 = vld [vmem:[#allocation2] sm:$0xff]  ;;  %v4374_v58 = vpack.c.bf16 %v566_v47, %v564_v46  ;;  %v4396_v7 = vpack.c.bf16 %v571_v50, %v569_v48 }
  0x23   : > { %v4366_v53 = vld [vmem:[#allocation2 + $0x28] sm:$0xff]  ;;  %v4368_v54 = vld [vmem:[#allocation2 + $0x38] sm:$0xff]  ;;  %v607_v55 = vsub.f32 0.0, %v4361_v51  ;;  %v609_v56 = vsub.f32 0.0, %v4363_v52  ;;  %v568_v59 = vld [vmem:[%s5129_s1 + $0xe0] sm:$0xff]  ;;  %v606_v2 = vsub.f32 0.0, %v4372_v57 }
  0x24   : > { %3424 = vmatpush1.bf16.msra.mxu0 %v4283_v27  ;;  %3552 = vmatpush1.bf16.msra.mxu1 %v4283_v27  ;;  %v570_v60 = vld [vmem:[%s5129_s1 + $0xf0] sm:$0xff]  ;;  %v611_v61 = vsub.f32 0.0, %v4366_v53  ;;  %v613_v62 = vsub.f32 0.0, %v4368_v54  ;;  %v4386_v0 = vld [vmem:[#allocation2 + $0x20] sm:$0xff]  ;;  %v573_v12 = vld [vmem:[%s5129_s1 + $0x108] sm:$0xff] }
  0x25   : > { %3426 = vmatprep.subr.bf16.mxu0 %v4287_v28  ;;  %3554 = vmatprep.subr.bf16.mxu1 %v4287_v28  ;;  %v4384_v63 = vld [vmem:[#allocation2 + $0x10] sm:$0xff]  ;;  %v616_v3 = vmul.f32 1.442695, %v607_v55  ;;  %v620_v4 = vmul.f32 1.442695, %v609_v56  ;;  %v610_v6 = vsub.f32 0.0, %v4386_v0  ;;  %v4413_v20 = vpack.c.bf16 %v570_v60, %v568_v59  ;;  %vm4726_vm2 = vmand %vm1061_vm0, %vm1062_vm1 }
  0x26   : > { %v4388_v1 = vld [vmem:[#allocation2 + $0x30] sm:$0xff]  ;;  %v608_v5 = vsub.f32 0.0, %v4384_v63  ;;  %v624_v8 = vmul.f32 1.442695, %v611_v61  ;;  %v628_v9 = vmul.f32 1.442695, %v613_v62  ;;  %vm4785_vm5 = vmand %vm1080_vm3, %vm1081_vm4 }
  0x27   : > { %v612_v10 = vsub.f32 0.0, %v4388_v1  ;;  %v575_v13 = vld [vmem:[%s5129_s1 + $0x118] sm:$0xff]  ;;  %3998 = vpow2.f32 %v616_v3  ;;  %v614_v14 = vmul.f32 1.442695, %v606_v2  ;;  %v572_v17 = vld [vmem:[%s5129_s1 + $0x100] sm:$0xff]  ;;  %v574_v18 = vld [vmem:[%s5129_s1 + $0x110] sm:$0xff] }
  0x28   : > { %3428 = vmatpush1.bf16.msra.mxu0 %v4303_v33  ;;  %3556 = vmatpush1.bf16.msra.mxu1 %v4303_v33  ;;  %4000 = vpow2.f32 %v620_v4  ;;  %v618_v19 = vmul.f32 1.442695, %v608_v5  ;;  %v577_v23 = vld [vmem:[%s5129_s1 + $0x128] sm:$0xff]  ;;  %v579_v24 = vld [vmem:[%s5129_s1 + $0x138] sm:$0xff]  ;;  %v622_v25 = vmul.f32 1.442695, %v610_v6  ;;  %v4423_v26 = vpack.c.bf16 %v575_v13, %v573_v12 }
  0x29   : > { %3430 = vmatprep.subr.bf16.mxu0 %v4307_v34  ;;  %3558 = vmatprep.subr.bf16.mxu1 %v4307_v34  ;;  %4002 = vpow2.f32 %v624_v8  ;;  %v626_v29 = vmul.f32 1.442695, %v612_v10  ;;  %v576_v30 = vld [vmem:[%s5129_s1 + $0x120] sm:$0xff]  ;;  %v578_v31 = vld [vmem:[%s5129_s1 + $0x130] sm:$0xff]  ;;  %v4433_v32 = vpack.c.bf16 %v574_v18, %v572_v17  ;;  %v581_v35 = vld [vmem:[%s5129_s1 + $0x148] sm:$0xff]  ;;  %v4443_v37 = vpack.c.bf16 %v579_v24, %v577_v23 }
  0x2a   : > { %4004 = vpow2.f32 %v628_v9  ;;  %v583_v36 = vld [vmem:[%s5129_s1 + $0x158] sm:$0xff]  ;;  %v580_v38 = vld [vmem:[%s5129_s1 + $0x140] sm:$0xff]  ;;  %v582_v41 = vld [vmem:[%s5129_s1 + $0x150] sm:$0xff]  ;;  %v4453_v43 = vpack.c.bf16 %v578_v31, %v576_v30 }
  0x2b   : > { %4006 = vpow2.f32 %v614_v14  ;;  %v585_v44 = vld [vmem:[%s5129_s1 + $0x168] sm:$0xff]  ;;  %v587_v46 = vld [vmem:[%s5129_s1 + $0x178] sm:$0xff]  ;;  %v4463_v48 = vpack.c.bf16 %v583_v36, %v581_v35  ;;  %v584_v60 = vld [vmem:[%s5129_s1 + $0x160] sm:$0xff]  ;;  %v4473_v3 = vpack.c.bf16 %v582_v41, %v580_v38 }
  0x2c   : > { %3432 = vmatpush1.bf16.msra.mxu0 %v4323_v39  ;;  %3560 = vmatpush1.bf16.msra.mxu1 %v4323_v39  ;;  %4008 = vpow2.f32 %v618_v19  ;;  %v586_v61 = vld [vmem:[%s5129_s1 + $0x170] sm:$0xff]  ;;  %v589_v4 = vld [vmem:[%s5129_s1 + $0x188] sm:$0xff]  ;;  %v591_v5 = vld [vmem:[%s5129_s1 + $0x198] sm:$0xff]  ;;  %v4483_v9 = vpack.c.bf16 %v587_v46, %v585_v44 }
  0x2d   : > { %3434 = vmatprep.subr.bf16.mxu0 %v4327_v40  ;;  %3562 = vmatprep.subr.bf16.mxu1 %v4327_v40  ;;  %4010 = vpow2.f32 %v622_v25  ;;  %v588_v17 = vld [vmem:[%s5129_s1 + $0x180] sm:$0xff]  ;;  %v590_v18 = vld [vmem:[%s5129_s1 + $0x190] sm:$0xff]  ;;  %v4493_v23 = vpack.c.bf16 %v586_v61, %v584_v60  ;;  %v593_v24 = vld [vmem:[%s5129_s1 + $0x1a8] sm:$0xff]  ;;  %v4503_v30 = vpack.c.bf16 %v591_v5, %v589_v4 }
  0x2e   : > { %4012 = vpow2.f32 %v626_v29  ;;  %v595_v25 = vld [vmem:[%s5129_s1 + $0x1b8] sm:$0xff]  ;;  %v592_v31 = vld [vmem:[%s5129_s1 + $0x1a0] sm:$0xff]  ;;  %v594_v35 = vld [vmem:[%s5129_s1 + $0x1b0] sm:$0xff]  ;;  %v4519_v41 = vpack.c.bf16 %v590_v18, %v588_v17 }
  0x2f   : > { %v597_v36 = vld [vmem:[%s5129_s1 + $0x1c8] sm:$0xff]  ;;  %v599_v38 = vld [vmem:[%s5129_s1 + $0x1d8] sm:$0xff]  ;;  %v4523_v44 = vpack.c.bf16 %v595_v25, %v593_v24  ;;  %v602_v17 = vld [vmem:[%s5129_s1 + $0x1f0] sm:$0xff] }
  0x30   : > { %3436 = vmatpush1.bf16.msra.mxu0 %v4343_v45  ;;  %3564 = vmatpush1.bf16.msra.mxu1 %v4343_v45  ;;  %v601_v60 = vld [vmem:[%s5129_s1 + $0x1e8] sm:$0xff] }
  0x31   : > { %3438 = vmatprep.subr.bf16.mxu0 %v4356_v49  ;;  %3566 = vmatprep.subr.bf16.mxu1 %v4356_v49  ;;  %v3999_v42 = vpop.eup %3998 }
  0x32   : > { %v4001_v47 = vpop.eup %4000  ;;  %v631_v50 = vadd.f32 1.0, %v3999_v42 }
  0x33   : > { %v4003_v55 = vpop.eup %4002  ;;  %v633_v56 = vadd.f32 1.0, %v4001_v47 }
  0x34   : > { %3440 = vmatpush1.bf16.msra.mxu0 %v4374_v58  ;;  %3568 = vmatpush1.bf16.msra.mxu1 %v4374_v58  ;;  %v4005_v59 = vpop.eup %4004  ;;  %v635_v62 = vadd.f32 1.0, %v4003_v55  ;;  %4014 = vrcp.f32 %v631_v50  ;;  %v4529_v55 = vpack.c.bf16 %v594_v35, %v592_v31 }
  0x35   : > { %3442 = vmatprep.subr.bf16.mxu0 %v4396_v7  ;;  %3570 = vmatprep.subr.bf16.mxu1 %v4396_v7  ;;  %v4007_v2 = vpop.eup %4006  ;;  %v637_v6 = vadd.f32 1.0, %v4005_v59  ;;  %4016 = vrcp.f32 %v633_v56  ;;  %v596_v56 = vld [vmem:[%s5129_s1 + $0x1c0] sm:$0xff]  ;;  %v598_v59 = vld [vmem:[%s5129_s1 + $0x1d0] sm:$0xff] }
  0x36   : > { %v4009_v8 = vpop.eup %4008  ;;  %4018 = vrcp.f32 %v635_v62  ;;  %v630_v10 = vadd.f32 1.0, %v4007_v2  ;;  %v4547_v2 = vpack.c.bf16 %v599_v38, %v597_v36 }
  0x37   : > { %v4011_v12 = vpop.eup %4010  ;;  %4020 = vrcp.f32 %v637_v6  ;;  %v632_v13 = vadd.f32 1.0, %v4009_v8 }
  0x38   : > { %3444 = vmatpush1.bf16.msra.mxu0 %v4413_v20  ;;  %3572 = vmatpush1.bf16.msra.mxu1 %v4413_v20  ;;  %v4013_v14 = vpop.eup %4012  ;;  %v634_v19 = vadd.f32 1.0, %v4011_v12  ;;  %4022 = vrcp.f32 %v630_v10 }
  0x39   : > { %3446 = vmatprep.subr.bf16.mxu0 %v4423_v26  ;;  %3574 = vmatprep.subr.bf16.mxu1 %v4423_v26  ;;  %v636_v29 = vadd.f32 1.0, %v4013_v14  ;;  %4024 = vrcp.f32 %v632_v13 }
  0x3a   : > { %4026 = vrcp.f32 %v634_v19 }
  0x3b   : > { %4028 = vrcp.f32 %v636_v29  ;;  %v4582_v29 = vpack.c.bf16 %v598_v59, %v596_v56 }
  0x3c   : > { %3448 = vmatpush1.bf16.msra.mxu0 %v4433_v32  ;;  %3576 = vmatpush1.bf16.msra.mxu1 %v4433_v32 }
  0x3d   : > { %3450 = vmatprep.subr.bf16.mxu0 %v4443_v37  ;;  %3578 = vmatprep.subr.bf16.mxu1 %v4443_v37  ;;  %5147 = vst [vmem:[#allocation4_spill] sm:$0xff] %v4582_v29 }
  0x3e   : > { %v4015_v42 = vpop.eup %4014 }
  0x3f   : > { %v4017_v46 = vpop.eup %4016  ;;  %v4527_v47 = vmul.f32 %v4015_v42, %v4361_v51  ;;  %v603_v51 = vld [vmem:[%s5129_s1 + $0x1f8] sm:$0xff] }
  0x40   : > { %3452 = vmatpush1.bf16.msra.mxu0 %v4453_v43  ;;  %3580 = vmatpush1.bf16.msra.mxu1 %v4453_v43  ;;  %v4019_v50 = vpop.eup %4018  ;;  %v4544_v61 = vmul.f32 %v4017_v46, %v4363_v52  ;;  %v4584_v31 = vpack.c.bf16 %v603_v51, %v601_v60 }
  0x41   : > { %3454 = vmatprep.subr.bf16.mxu0 %v4463_v48  ;;  %3582 = vmatprep.subr.bf16.mxu1 %v4463_v48  ;;  %v4021_v62 = vpop.eup %4020  ;;  %v4550_v4 = vmul.f32 %v4019_v50, %v4366_v53  ;;  %v675_v5 = vmul.f32 %v4527_v47, %v4527_v47 }
  0x42   : > { %v4023_v6 = vpop.eup %4022  ;;  %v4557_v8 = vmul.f32 %v4021_v62, %v4368_v54  ;;  %v665_v52 = vadd.f32 %v4544_v61, %v4527_v47  ;;  %v677_v10 = vmul.f32 %v4544_v61, %v4544_v61  ;;  %v600_v54 = vld [vmem:[%s5129_s1 + $0x1e0] sm:$0xff]  ;;  %5148 = vst [vmem:[#allocation5_spill] sm:$0xff] %v4584_v31 }
  0x43   : > { %v4025_v53 = vpop.eup %4024  ;;  %v4565_v12 = vmul.f32 %v4023_v6, %v4372_v57  ;;  %v679_v13 = vmul.f32 %v4550_v4, %v4550_v4  ;;  %v4600_v56 = vpack.c.bf16 %v602_v17, %v600_v54 }
  0x44   : > { %3456 = vmatpush1.bf16.msra.mxu0 %v4473_v3  ;;  %3584 = vmatpush1.bf16.msra.mxu1 %v4473_v3  ;;  %v4027_v14 = vpop.eup %4026  ;;  %v666_v18 = vadd.f32 %v665_v52, %v4550_v4  ;;  %v4577_v19 = vmul.f32 %v4025_v53, %v4384_v63  ;;  %v681_v57 = vmul.f32 %v4557_v8, %v4557_v8 }
  0x45   : > { %3458 = vmatprep.subr.bf16.mxu0 %v4483_v9  ;;  %3586 = vmatprep.subr.bf16.mxu1 %v4483_v9  ;;  %v691_v24 = vadd.f32 %v677_v10, %v675_v5  ;;  %v4029_v25 = vpop.eup %4028  ;;  %v4587_v35 = vmul.f32 %v4027_v14, %v4386_v0  ;;  %5149 = vst [vmem:[#allocation6_spill] sm:$0xff] %v4600_v56 }
  0x46   : > { %v667_v63 = vadd.f32 %v666_v18, %v4557_v8  ;;  %v4593_v36 = vmul.f32 %v4029_v25, %v4388_v1  ;;  %v656_v38 = vadd.f32 %v4577_v19, %v4565_v12 }
  0x47   : > { %v692_v42 = vadd.f32 %v691_v24, %v679_v13 }
  0x48   : > { %3460 = vmatpush1.bf16.msra.mxu0 %v4493_v23  ;;  %3588 = vmatpush1.bf16.msra.mxu1 %v4493_v23  ;;  %v668_v46 = vrot.slane %v667_v63, 4  ;;  %v657_v50 = vadd.f32 %v656_v38, %v4587_v35  ;;  %v678_v38 = vmul.f32 %v4587_v35, %v4587_v35 }
  0x49   : > { %3462 = vmatprep.subr.bf16.mxu0 %v4503_v30  ;;  %3590 = vmatprep.subr.bf16.mxu1 %v4503_v30  ;;  %v693_v0 = vadd.f32 %v692_v42, %v681_v57 }
  0x4a   : > { %v669_v1 = vadd.f32 %v668_v46, %v667_v63  ;;  %v658_v59 = vadd.f32 %v657_v50, %v4593_v36  ;;  %v676_v63 = vmul.f32 %v4577_v19, %v4577_v19  ;;  %v680_v46 = vmul.f32 %v4593_v36, %v4593_v36 }
  0x4b   : > { %v694_v60 = vrot.slane %v693_v0, 4 }
  0x4c   : > { %3464 = vmatpush1.bf16.msra.mxu0 %v4519_v41  ;;  %3592 = vmatpush1.bf16.msra.mxu1 %v4519_v41  ;;  %v670_v51 = vrot.slane %v669_v1, 2  ;;  %v659_v62 = vrot.slane %v658_v59, 4 }
  0x4d   : > { %3466 = vmatprep.subr.bf16.mxu0 %v4523_v44  ;;  %3594 = vmatprep.subr.bf16.mxu1 %v4523_v44  ;;  %v695_v5 = vadd.f32 %v694_v60, %v693_v0 }
  0x4e   : > { %v671_v6 = vadd.f32 %v670_v51, %v669_v1  ;;  %v660_v52 = vadd.f32 %v659_v62, %v658_v59 }
  0x4f   : > { %v696_v10 = vrot.slane %v695_v5, 2 }
  0x50   : > { %3468 = vmatpush1.bf16.msra.mxu0 %v4529_v55  ;;  %3596 = vmatpush1.bf16.msra.mxu1 %v4529_v55  ;;  %v672_v53 = vrot.slane %v671_v6, 1  ;;  %v661_v13 = vrot.slane %v660_v52, 2 }
  0x51   : > { %3470 = vmatprep.subr.bf16.mxu0 %v4547_v2  ;;  %3598 = vmatprep.subr.bf16.mxu1 %v4547_v2  ;;  %v697_v14 = vadd.f32 %v696_v10, %v695_v5  ;;  %v3715_v10 = vld [vmem:[%s4184_s2 + $0x14] ss:$8 sps:$4 sm:$0xff]  }
  0x52   : > { %v673_v54 = vadd.f32 %v672_v53, %v671_v6  ;;  %v662_v17 = vadd.f32 %v661_v13, %v660_v52  ;;  %v3710_v6 = vld [vmem:[%s4184_s2] ss:$8 sps:$4 sm:$0xff]   ;;  %v3712_v52 = vld [vmem:[%s4184_s2 + $0x4] ss:$8 sps:$4 sm:$0xff]   ;;  %v3713_v53 = vld [vmem:[%s4184_s2 + $0x10] ss:$8 sps:$4 sm:$0xff]  }
  0x53   : > { %v698_v18 = vrot.slane %v697_v14, 1  ;;  %v3718_v13 = vld [vmem:[%s4184_s2 + $0x24] ss:$8 sps:$4 sm:$0xff]  }
  0x54   : > { %3472 = vmatpush1.bf16.msra.mxu0 %v4582_v29  ;;  %3600 = vmatpush1.bf16.msra.mxu1 %v4582_v29  ;;  %v663_v57 = vrot.slane %v662_v17, 1 }
  0x55   : > { %3474 = vmatprep.subr.bf16.mxu0 %v4584_v31  ;;  %3602 = vmatprep.subr.bf16.mxu1 %v4584_v31  ;;  %v699_v24 = vadd.f32 %v698_v18, %v697_v14  ;;  %v3716_v14 = vld [vmem:[%s4184_s2 + $0x20] ss:$8 sps:$4 sm:$0xff]   ;;  %v3724_v18 = vld [vmem:[%s4184_s2 + $0x44] ss:$8 sps:$4 sm:$0xff]  }
  0x56   : > { %764 = vmatprep.mubr.f32.mxu0 %v673_v54  ;;  %v664_v25 = vadd.f32 %v663_v57, %v662_v17  ;;  %v3721_v54 = vld [vmem:[%s4184_s2 + $0x34] ss:$8 sps:$4 sm:$0xff]   ;;  %v3719_v17 = vld [vmem:[%s4184_s2 + $0x30] ss:$8 sps:$4 sm:$0xff]   ;;  %v3722_v57 = vld [vmem:[%s4184_s2 + $0x40] ss:$8 sps:$4 sm:$0xff]  }
  0x58   : > { %3476 = vmatpush1.bf16.msra.mxu0 %v4600_v56  ;;  %3604 = vmatpush1.bf16.msra.mxu1 %v4600_v56 }
  0x59   : > { %3478 = vmatprep.subr.bf16.mxu0 %v4233_v11  ;;  %3606 = vmatprep.subr.bf16.mxu1 %v4233_v11  ;;  %v674_v11 = vmul.f32 %v4565_v12, %v4565_v12 }
  0x5b   : > { %765 = vmatmul.mubr.f32.vlgmr.msra.gmra.mrb[0].mxu0 %v664_v25  ;;  %v682_v42 = vadd.f32 %v676_v63, %v674_v11  ;;  %v3725_v25 = vld [vmem:[%s4184_s2 + $0x50] ss:$8 sps:$4 sm:$0xff]   ;;  %v3730_v11 = vld [vmem:[%s4184_s2 + $0x64] ss:$8 sps:$4 sm:$0xff]   ;;  %v3728_v63 = vld [vmem:[%s4184_s2 + $0x60] ss:$8 sps:$4 sm:$0xff]  }
  0x5c   : > { %3480 = vmatpush1.bf16.msra.mxu0 %v4244_v15  ;;  %837 = vmatprep.mubr.f32.mxu0 %v699_v24  ;;  %v3727_v24 = vld [vmem:[%s4184_s2 + $0x54] ss:$8 sps:$4 sm:$0xff]  }
  0x5d   : > { %3482 = vmatprep.subr.bf16.mxu0 %v4246_v16  ;;  %v683_v50 = vadd.f32 %v682_v42, %v678_v38  ;;  %v3733_v38 = vld [vmem:[%s4184_s2 + $0x74] ss:$8 sps:$4 sm:$0xff]   ;;  %v3731_v42 = vld [vmem:[%s4184_s2 + $0x70] ss:$8 sps:$4 sm:$0xff]  }
  0x5f   : > { %v684_v0 = vadd.f32 %v683_v50, %v680_v46  ;;  %v3736_v46 = vld [vmem:[%s4184_s2 + $0x84] ss:$8 sps:$4 sm:$0xff]   ;;  %v3734_v50 = vld [vmem:[%s4184_s2 + $0x80] ss:$8 sps:$4 sm:$0xff]  }
  0x60   : > { %3484 = vmatpush1.bf16.msra.mxu0 %v4263_v21 }
  0x61   : > { %3486 = vmatprep.subr.bf16.mxu0 %v4267_v22  ;;  %v685_v1 = vrot.slane %v684_v0, 4 }
  0x63   : > { %v686_v59 = vadd.f32 %v685_v1, %v684_v0  ;;  %v3739_v0 = vld [vmem:[%s4184_s2 + $0x94] ss:$8 sps:$4 sm:$0xff]   ;;  %v3737_v1 = vld [vmem:[%s4184_s2 + $0x90] ss:$8 sps:$4 sm:$0xff]  }
  0x64   : > { %3488 = vmatpush1.bf16.msra.mxu0 %v4283_v27 }
  0x65   : > { %3490 = vmatprep.subr.bf16.mxu0 %v4287_v28  ;;  %v687_v60 = vrot.slane %v686_v59, 2 }
  0x67   : > { %v688_v51 = vadd.f32 %v687_v60, %v686_v59  ;;  %v3742_v59 = vld [vmem:[%s4184_s2 + $0xa4] ss:$8 sps:$4 sm:$0xff]   ;;  %v3740_v60 = vld [vmem:[%s4184_s2 + $0xa0] ss:$8 sps:$4 sm:$0xff]  }
  0x68   : > { %3492 = vmatpush1.bf16.msra.mxu0 %v4303_v33 }
  0x69   : > { %3494 = vmatprep.subr.bf16.mxu0 %v4307_v34  ;;  %v689_v62 = vrot.slane %v688_v51, 1 }
  0x6b   : > { %v690_v5 = vadd.f32 %v689_v62, %v688_v51  ;;  %v3745_v51 = vld [vmem:[%s4184_s2 + $0xb4] ss:$8 sps:$4 sm:$0xff]   ;;  %v3743_v62 = vld [vmem:[%s4184_s2 + $0xb0] ss:$8 sps:$4 sm:$0xff]  }
  0x6c   : > { %3496 = vmatpush1.bf16.msra.mxu0 %v4323_v39 }
  0x6d   : > { %3498 = vmatprep.subr.bf16.mxu0 %v4327_v40 }
  0x70   : > { %3500 = vmatpush1.bf16.msra.mxu0 %v4343_v45 }
  0x71   : > { %3502 = vmatprep.subr.bf16.mxu0 %v4356_v49 }
  0x74   : > { %3504 = vmatpush1.bf16.msra.mxu0 %v4374_v58 }
  0x75   : > { %3506 = vmatprep.subr.bf16.mxu0 %v4396_v7 }
  0x78   : > { %3508 = vmatpush1.bf16.msra.mxu0 %v4413_v20 }
  0x79   : > { %3510 = vmatprep.subr.bf16.mxu0 %v4423_v26 }
  0x7c   : > { %3512 = vmatpush1.bf16.msra.mxu0 %v4433_v32 }
  0x7d   : > { %3514 = vmatprep.subr.bf16.mxu0 %v4443_v37 }
  0x80   : > { %3516 = vmatpush1.bf16.msra.mxu0 %v4453_v43 }
  0x81   : > { %3518 = vmatprep.subr.bf16.mxu0 %v4463_v48 }
  0x84   : > { %3520 = vmatpush1.bf16.msra.mxu0 %v4473_v3 }
  0x85   : > { %3522 = vmatprep.subr.bf16.mxu0 %v4483_v9 }
  0x88   : > { %3524 = vmatpush1.bf16.msra.mxu0 %v4493_v23 }
  0x89   : > { %3526 = vmatprep.subr.bf16.mxu0 %v4503_v30 }
  0x8c   : > { %3528 = vmatpush1.bf16.msra.mxu0 %v4519_v41 }
  0x8d   : > { %3530 = vmatprep.subr.bf16.mxu0 %v4523_v44 }
  0x90   : > { %3532 = vmatpush1.bf16.msra.mxu0 %v4529_v55 }
  0x91   : > { %3534 = vmatprep.subr.bf16.mxu0 %v4547_v2 }
  0x94   : > { %3536 = vmatpush1.bf16.msra.mxu0 %v4582_v29 }
  0x95   : > { %3538 = vmatprep.subr.bf16.mxu0 %v4584_v31 }
  0x98   : > { %3540 = vmatpush1.bf16.msra.mxu0 %v4600_v56 }
  0x99   : > { %1247 = vmatprep.subr.bf16.mxu0 %v3712_v52  ;;  %v3751_v52 = vld [vmem:[%s4184_s2 + $0xd4] ss:$8 sps:$4 sm:$0xff]  }
  0x9b   : > { %838 = vmatmul.mubr.f32.vlgmr.msra.gmra.mrb[2].mxu0 %v690_v5  ;;  %v3748_v5 = vld [vmem:[%s4184_s2 + $0xc4] ss:$8 sps:$4 sm:$0xff]  }
  0x9c   : > { %1248 = vmatpush1.bf16.msra.mxu0 %v3710_v6  ;;  %v3746_v6 = vld [vmem:[%s4184_s2 + $0xc0] ss:$8 sps:$4 sm:$0xff]  }
  0x9d   : > { %1249 = vmatprep.subr.bf16.mxu0 %v3715_v10  ;;  %v3749_v10 = vld [vmem:[%s4184_s2 + $0xd0] ss:$8 sps:$4 sm:$0xff]  }
  0xa0   : > { %1250 = vmatpush1.bf16.msra.mxu0 %v3713_v53  ;;  %v3754_v53 = vld [vmem:[%s4184_s2 + $0xe4] ss:$8 sps:$4 sm:$0xff]  }
  0xa1   : > { %1251 = vmatprep.subr.bf16.mxu0 %v3718_v13  ;;  %v3752_v13 = vld [vmem:[%s4184_s2 + $0xe0] ss:$8 sps:$4 sm:$0xff]  }
  0xa4   : > { %1252 = vmatpush1.bf16.msra.mxu0 %v3716_v14  ;;  %v3757_v14 = vld [vmem:[%s4184_s2 + $0xf4] ss:$8 sps:$4 sm:$0xff]  }
  0xa5   : > { %1253 = vmatprep.subr.bf16.mxu0 %v3721_v54  ;;  %v3755_v54 = vld [vmem:[%s4184_s2 + $0xf0] ss:$8 sps:$4 sm:$0xff]  }
  0xa8   : > { %1254 = vmatpush1.bf16.msra.mxu0 %v3719_v17  ;;  %v3760_v17 = vld [vmem:[%s4184_s2 + $0x104] ss:$8 sps:$4 sm:$0xff]  }
  0xa9   : > { %1255 = vmatprep.subr.bf16.mxu0 %v3724_v18 }
  0xac   : > { %1256 = vmatpush1.bf16.msra.mxu0 %v3722_v57 }
  0xad   : > { %1257 = vmatprep.subr.bf16.mxu0 %v3727_v24 }
  0xb0   : > { %1258 = vmatpush1.bf16.msra.mxu0 %v3725_v25 }
  0xb1   : > { %1259 = vmatprep.subr.bf16.mxu0 %v3730_v11 }
  0xb4   : > { %1260 = vmatpush1.bf16.msra.mxu0 %v3728_v63 }
  0xb5   : > { %1261 = vmatprep.subr.bf16.mxu0 %v3733_v38 }
  0xb8   : > { %1262 = vmatpush1.bf16.msra.mxu0 %v3731_v42 }
  0xb9   : > { %1263 = vmatprep.subr.bf16.mxu0 %v3736_v46 }
  0xbc   : > { %1264 = vmatpush1.bf16.msra.mxu0 %v3734_v50 }
  0xbd   : > { %1265 = vmatprep.subr.bf16.mxu0 %v3739_v0  ;;  %v852_v0 = vlaneseq }
  0xc0   : > { %1266 = vmatpush1.bf16.msra.mxu0 %v3737_v1 }
  0xc1   : > { %1267 = vmatprep.subr.bf16.mxu0 %v3742_v59 }
  0xc4   : > { %1268 = vmatpush1.bf16.msra.mxu0 %v3740_v60 }
  0xc5   : > { %1269 = vmatprep.subr.bf16.mxu0 %v3745_v51 }
  0xc8   : > { %1270 = vmatpush1.bf16.msra.mxu0 %v3743_v62  ;;  %v853_v62 = vshrl.u32 %v852_v0, 7 }
  0xc9   : > { %1271 = vmatprep.subr.bf16.mxu0 %v3748_v5 }
  0xcc   : > { %1272 = vmatpush1.bf16.msra.mxu0 %v3746_v6 }
  0xcd   : > { %1273 = vmatprep.subr.bf16.mxu0 %v3751_v52  ;;  %v4682_v52 = vsub.s32 0, %v853_v62 }
  0xd0   : > { %1274 = vmatpush1.bf16.msra.mxu0 %v3749_v10 }
  0xd1   : > { %1275 = vmatprep.subr.bf16.mxu0 %v3754_v53  ;;  %v654_v53 = vld [vmem:[%s5150_s20] sm:$0x3] }
  0xd4   : > { %1276 = vmatpush1.bf16.msra.mxu0 %v3752_v13  ;;  %v655_v13 = vld [vmem:[%s484_s30] sm:$0x3] }
  0xd5   : > { %1277 = vmatprep.subr.bf16.mxu0 %v3757_v14  ;;  %v4695_v14 = vsub.s32 1, %v853_v62 }
  0xd8   : > { %1278 = vmatpush1.bf16.msra.mxu0 %v3755_v54 }
  0xd9   : > { %1460 = vmatprep.subr.bf16.mxu0 %v3760_v17  ;;  %v892_v17 = vrot.slane %v654_v53, %v4682_v52 }
 0x12e   : > { %v766_v18 = vpop.f32.mrb[0].mxu0 }
 0x12f   : > { %v768_v57 = vpop.f32.mrb[1].mxu0  ;;  %v771_v24 = vmul.f32 0.001953125, %v766_v18  ;;  %v911_v18 = vrot.slane %v655_v13, %v4682_v52 }
 0x130   : > { %v772_v25 = vmul.f32 0.001953125, %v768_v57 }
 0x131   : > { %v846_v63 = vmul.f32 %v771_v24, %v771_v24  ;;  %v855_v10 = vrot.slane %v771_v24, %v4682_v52 }
 0x132   : > { %v847_v46 = vmul.f32 %v772_v25, %v772_v25  ;;  %v859_v54 = vrot.slane %v772_v25, %v4682_v52 }
 0x133   : > { %v860_v24 = vsub.f32 %v4565_v12, %v855_v10 }
 0x134   : > { %v861_v25 = vsub.f32 %v4527_v47, %v859_v54  ;;  %v867_v12 = vsub.f32 %v4557_v8, %v859_v54 }
 0x16e   : > { %v839_v11 = vpop.f32.mrb[2].mxu0 }
 0x16f   : > { %v844_v38 = vmul.f32 0.001953125, %v839_v11  ;;  %v841_v42 = vpop.f32.mrb[3].mxu0  ;;  %v862_v11 = vsub.f32 %v4577_v19, %v855_v10 }
 0x170   : > { %v845_v50 = vmul.f32 0.001953125, %v841_v42 }
 0x171   : > { %v848_v1 = vsub.f32 %v844_v38, %v846_v63  ;;  %v896_v63 = vrot.slane %v654_v53, %v4695_v14  ;;  %v915_v38 = vrot.slane %v655_v13, %v4695_v14 }
 0x172   : > { %v849_v59 = vsub.f32 %v845_v50, %v847_v46  ;;  %v864_v46 = vsub.f32 %v4587_v35, %v855_v10  ;;  %v866_v50 = vsub.f32 %v4593_v36, %v855_v10 }
 0x173   : > { %v850_v60 = vmax.f32 %v848_v1, 0.0  ;;  %v863_v1 = vsub.f32 %v4544_v61, %v859_v54 }
 0x174   : > { %v851_v51 = vmax.f32 %v849_v59, 0.0  ;;  %v865_v59 = vsub.f32 %v4550_v4, %v859_v54 }
 0x175   : > { %v868_v5 = vadd.f32 1e-05, %v850_v60 }
 0x176   : > { %v869_v6 = vadd.f32 1e-05, %v851_v51 }
 0x177   : > { %4030 = vrsqrt.f32 %v868_v5 }
 0x178   : > { %4032 = vrsqrt.f32 %v869_v6 }
 0x181   : > { %v4031_v57 = vpop.eup %4030 }
 0x182   : > { %v4033_v42 = vpop.eup %4032  ;;  %v875_v0 = vrot.slane %v4031_v57, %v4682_v52 }
 0x183   : > { %v879_v19 = vrot.slane %v4033_v42, %v4682_v52 }
 0x184   : > { %v880_v60 = vmul.f32 %v875_v0, %v860_v24  ;;  %v882_v51 = vmul.f32 %v875_v0, %v862_v11  ;;  %v884_v62 = vmul.f32 %v875_v0, %v864_v46  ;;  %v886_v5 = vmul.f32 %v875_v0, %v866_v50 }
 0x185   : > { %v881_v6 = vmul.f32 %v879_v19, %v861_v25  ;;  %v883_v35 = vmul.f32 %v879_v19, %v863_v1  ;;  %v885_v53 = vmul.f32 %v879_v19, %v865_v59  ;;  %v887_v36 = vmul.f32 %v879_v19, %v867_v12 }
 0x186   : > { %v899_v10 = vmul.f32 %v892_v17, %v880_v60  ;;  %v901_v47 = vmul.f32 %v892_v17, %v882_v51  ;;  %v903_v13 = vmul.f32 %v892_v17, %v884_v62  ;;  %v905_v57 = vmul.f32 %v892_v17, %v886_v5 }
 0x187   : > { %v900_v56 = vmul.f32 %v896_v63, %v881_v6  ;;  %v902_v61 = vmul.f32 %v896_v63, %v883_v35  ;;  %v904_v31 = vmul.f32 %v896_v63, %v885_v53  ;;  %v906_v4 = vmul.f32 %v896_v63, %v887_v36  ;;  %v3922_v53 = vld [vmem:[%s4193_s19 + $0x164] ss:$8 sps:$4 sm:$0xff]  }
 0x188   : > { %v918_v29 = vadd.f32 %v911_v18, %v899_v10  ;;  %v920_v8 = vadd.f32 %v911_v18, %v901_v47  ;;  %v922_v54 = vadd.f32 %v911_v18, %v903_v13  ;;  %v924_v42 = vadd.f32 %v911_v18, %v905_v57 }
 0x189   : > { %v919_v24 = vadd.f32 %v915_v38, %v900_v56  ;;  %v921_v11 = vadd.f32 %v915_v38, %v902_v61  ;;  %v923_v46 = vadd.f32 %v915_v38, %v904_v31  ;;  %v925_v50 = vadd.f32 %v915_v38, %v906_v4 }
 0x18a   : > { %v4712_v25 = vpack.c.bf16 %v920_v8, %v918_v29  ;;  %v4714_v0 = vpack.c.bf16 %v924_v42, %v922_v54  ;;  %v3758_v8 = vld [vmem:[%s4184_s2 + $0x100] ss:$8 sps:$4 sm:$0xff]   ;;  %v3763_v42 = vld [vmem:[%s4184_s2 + $0x114] ss:$8 sps:$4 sm:$0xff]  }
 0x18b   : > { %v927_v1 = vpack.c.bf16 %v921_v11, %v919_v24  ;;  %v4716_v59 = vpack.c.bf16 %v925_v50, %v923_v46  ;;  %v3761_v50 = vld [vmem:[%s4184_s2 + $0x110] ss:$8 sps:$4 sm:$0xff]  }
 0x18c   : > { %v1030_v17 = vshrl.u32 %v4712_v25, 16  ;;  %v1033_v63 = vshll.u32 %v4712_v25, 16  ;;  %v1047_v12 = vshll.u32 %v4714_v0, 16  ;;  %v1044_v60 = vshrl.u32 %v4714_v0, 16 }
 0x18d   : > { %v1037_v18 = vshrl.u32 %v927_v1, 16  ;;  %v1040_v56 = vshll.u32 %v927_v1, 16  ;;  %v1051_v31 = vshrl.u32 %v4716_v59, 16  ;;  %v1054_v29 = vshll.u32 %v4716_v59, 16 }
 0x18e   : > { %v1032_v38 = vrot.slane %v1030_v17, 7  ;;  %v1068_v19 = vrot.slane %v1033_v63, 1  ;;  %v1072_v51 = vrot.slane %v1047_v12, 1  ;;  %v1046_v11 = vrot.slane %v1044_v60, 7 }
 0x18f   : > { %v1039_v62 = vrot.slane %v1037_v18, 7  ;;  %v1053_v5 = vrot.slane %v1051_v31, 7  ;;  %v1070_v6 = vrot.slane %v1040_v56, 1  ;;  %v1074_v35 = vrot.slane %v1054_v29, 1 }
 0x190   : > { %v1035_v36 = vor.u32 %v1033_v63, %v1032_v38  ;;  %v4730_v10 = vor.u32 %v1068_v19, %v1030_v17  ;;  %v4732_v47 = vor.u32 %v1072_v51, %v1044_v60  ;;  %v3766_v17 = vld [vmem:[%s4184_s2 + $0x124] ss:$8 sps:$4 sm:$0xff]   ;;  %v1049_v63 = vor.u32 %v1047_v12, %v1046_v11  ;;  %v3770_v12 = vld [vmem:[%s4184_s2 + $0x140] ss:$8 sps:$4 sm:$0xff]   ;;  %v3775_v19 = vld [vmem:[%s4184_s2 + $0x154] ss:$8 sps:$4 sm:$0xff]  }
 0x191   : > { %v1042_v13 = vor.u32 %v1040_v56, %v1039_v62  ;;  %v1056_v57 = vor.u32 %v1054_v29, %v1053_v5  ;;  %v4734_v61 = vor.u32 %v1070_v6, %v1037_v18  ;;  %v4736_v4 = vor.u32 %v1074_v35, %v1051_v31  ;;  %v3764_v18 = vld [vmem:[%s4184_s2 + $0x120] ss:$8 sps:$4 sm:$0xff]   ;;  %v3769_v56 = vld [vmem:[%s4184_s2 + $0x134] ss:$8 sps:$4 sm:$0xff]   ;;  %v3767_v29 = vld [vmem:[%s4184_s2 + $0x130] ss:$8 sps:$4 sm:$0xff]  }
 0x192   : > { %v1064_v24 = vsel %vm4726_vm2, 0, %v1035_v36  ;;  %v1066_v31 = vsel %vm4726_vm2, 0, %v1049_v63  ;;  %v3772_v38 = vld [vmem:[%s4184_s2 + $0x144] ss:$8 sps:$4 sm:$0xff]   ;;  %v3773_v60 = vld [vmem:[%s4184_s2 + $0x150] ss:$8 sps:$4 sm:$0xff]  }
 0x193   : > { %v1065_v54 = vsel %vm4726_vm2, 0, %v1042_v13  ;;  %v1067_v46 = vsel %vm4726_vm2, 0, %v1056_v57  ;;  %v3778_v51 = vld [vmem:[%s4184_s2 + $0x164] ss:$8 sps:$4 sm:$0xff]   ;;  %v3776_v62 = vld [vmem:[%s4184_s2 + $0x160] ss:$8 sps:$4 sm:$0xff]  }
 0x194   : > { %1279 = vmatprep.mubr.bf16.mxu0 %v1065_v54  ;;  %v3779_v5 = vld [vmem:[%s4184_s2 + $0x170] ss:$8 sps:$4 sm:$0xff]   ;;  %v3784_v6 = vld [vmem:[%s4184_s2 + $0x184] ss:$8 sps:$4 sm:$0xff]   ;;  %v3782_v35 = vld [vmem:[%s4184_s2 + $0x180] ss:$8 sps:$4 sm:$0xff]  }
 0x195   : > { %1280 = vmatmul.mubr.bf16.vlgmr.msra.gmra.mrb[4].mxu0 %v1064_v24  ;;  %v3787_v36 = vld [vmem:[%s4184_s2 + $0x194] ss:$8 sps:$4 sm:$0xff]   ;;  %v3785_v13 = vld [vmem:[%s4184_s2 + $0x190] ss:$8 sps:$4 sm:$0xff]   ;;  %v3790_v57 = vld [vmem:[%s4184_s2 + $0x1a4] ss:$8 sps:$4 sm:$0xff]  }
 0x196   : > { %1461 = vmatpush1.bf16.msra.mxu0 %v3758_v8  ;;  %1289 = vmatprep.mubr.bf16.mxu0 %v1067_v46  ;;  %v3788_v8 = vld [vmem:[%s4184_s2 + $0x1a0] ss:$8 sps:$4 sm:$0xff]   ;;  %v3793_v54 = vld [vmem:[%s4184_s2 + $0x1b4] ss:$8 sps:$4 sm:$0xff]   ;;  %v3796_v24 = vld [vmem:[%s4184_s2 + $0x1c4] ss:$8 sps:$4 sm:$0xff]  }
 0x197   : > { %1462 = vmatprep.subr.bf16.mxu0 %v3763_v42  ;;  %v3791_v42 = vld [vmem:[%s4184_s2 + $0x1b0] ss:$8 sps:$4 sm:$0xff]   ;;  %v3794_v11 = vld [vmem:[%s4184_s2 + $0x1c0] ss:$8 sps:$4 sm:$0xff]   ;;  %v3799_v46 = vld [vmem:[%s4184_s2 + $0x1d4] ss:$8 sps:$4 sm:$0xff]  }
 0x198   : > { %v3800_v63 = vld [vmem:[%s4184_s2 + $0x1e0] ss:$8 sps:$4 sm:$0xff]  }
 0x19a   : > { %1463 = vmatpush1.bf16.msra.mxu0 %v3761_v50  ;;  %v3797_v50 = vld [vmem:[%s4184_s2 + $0x1d0] ss:$8 sps:$4 sm:$0xff]  }
 0x19b   : > { %1464 = vmatprep.subr.bf16.mxu0 %v3766_v17  ;;  %v3802_v17 = vld [vmem:[%s4184_s2 + $0x1e4] ss:$8 sps:$4 sm:$0xff]  }
 0x19d   : > { %1290 = vmatmul.mubr.bf16.gmra.mrb[8].mxu0 %v1066_v31  ;;  %v3808_v31 = vld [vmem:[%s4184_s2 + $0x204] ss:$8 sps:$4 sm:$0xff]  }
 0x19e   : > { %1465 = vmatpush1.bf16.msra.mxu0 %v3764_v18  ;;  %1492 = vmatprep.mubr.bf16.mxu0 %v927_v1  ;;  %v3781_v1 = vld [vmem:[%s4184_s2 + $0x174] ss:$8 sps:$4 sm:$0xff]  }
 0x19f   : > { %1466 = vmatprep.subr.bf16.mxu0 %v3769_v56  ;;  %v3805_v18 = vld [vmem:[%s4184_s2 + $0x1f4] ss:$8 sps:$4 sm:$0xff]   ;;  %v3803_v56 = vld [vmem:[%s4184_s2 + $0x1f0] ss:$8 sps:$4 sm:$0xff]  }
 0x1a2   : > { %1467 = vmatpush1.bf16.msra.mxu0 %v3767_v29  ;;  %v3806_v29 = vld [vmem:[%s4184_s2 + $0x200] ss:$8 sps:$4 sm:$0xff]  }
 0x1a3   : > { %1468 = vmatprep.subr.bf16.mxu0 %v3772_v38  ;;  %v3811_v38 = vld [vmem:[%s4184_s2 + $0x214] ss:$8 sps:$4 sm:$0xff]  }
 0x1a6   : > { %1469 = vmatpush1.bf16.msra.mxu0 %v3770_v12  ;;  %v3809_v12 = vld [vmem:[%s4184_s2 + $0x210] ss:$8 sps:$4 sm:$0xff]  }
 0x1a7   : > { %1470 = vmatprep.subr.bf16.mxu0 %v3775_v19  ;;  %v3814_v19 = vld [vmem:[%s4184_s2 + $0x224] ss:$8 sps:$4 sm:$0xff]  }
 0x1aa   : > { %1471 = vmatpush1.bf16.msra.mxu0 %v3773_v60  ;;  %v3812_v60 = vld [vmem:[%s4184_s2 + $0x220] ss:$8 sps:$4 sm:$0xff]  }
 0x1ab   : > { %1472 = vmatprep.subr.bf16.mxu0 %v3778_v51 }
 0x1ae   : > { %1473 = vmatpush1.bf16.msra.mxu0 %v3776_v62  ;;  %v3815_v62 = vld [vmem:[%s4184_s2 + $0x230] ss:$8 sps:$4 sm:$0xff]  }
 0x1af   : > { %1474 = vmatprep.subr.bf16.mxu0 %v3781_v1  ;;  %v3820_v1 = vld [vmem:[%s4184_s2 + $0x244] ss:$8 sps:$4 sm:$0xff]  }
 0x1b2   : > { %1475 = vmatpush1.bf16.msra.mxu0 %v3779_v5  ;;  %v3818_v5 = vld [vmem:[%s4184_s2 + $0x240] ss:$8 sps:$4 sm:$0xff]  }
 0x1b3   : > { %1476 = vmatprep.subr.bf16.mxu0 %v3784_v6  ;;  %v3823_v6 = vld [vmem:[%s4184_s2 + $0x254] ss:$8 sps:$4 sm:$0xff]  }
 0x1b6   : > { %1477 = vmatpush1.bf16.msra.mxu0 %v3782_v35  ;;  %v3826_v35 = vld [vmem:[%s4184_s2 + $0x264] ss:$8 sps:$4 sm:$0xff]  }
 0x1b7   : > { %1478 = vmatprep.subr.bf16.mxu0 %v3787_v36  ;;  %v3829_v36 = vld [vmem:[%s4184_s2 + $0x274] ss:$8 sps:$4 sm:$0xff]  }
 0x1ba   : > { %1479 = vmatpush1.bf16.msra.mxu0 %v3785_v13  ;;  %v3827_v13 = vld [vmem:[%s4184_s2 + $0x270] ss:$8 sps:$4 sm:$0xff]  }
 0x1bb   : > { %1480 = vmatprep.subr.bf16.mxu0 %v3790_v57  ;;  %v3832_v57 = vld [vmem:[%s4184_s2 + $0x284] ss:$8 sps:$4 sm:$0xff]  }
 0x1be   : > { %1481 = vmatpush1.bf16.msra.mxu0 %v3788_v8  ;;  %v3830_v8 = vld [vmem:[%s4184_s2 + $0x280] ss:$8 sps:$4 sm:$0xff]  }
 0x1bf   : > { %1482 = vmatprep.subr.bf16.mxu0 %v3793_v54  ;;  %v3835_v54 = vld [vmem:[%s4184_s2 + $0x294] ss:$8 sps:$4 sm:$0xff]  }
 0x1c2   : > { %1483 = vmatpush1.bf16.msra.mxu0 %v3791_v42  ;;  %v3833_v42 = vld [vmem:[%s4184_s2 + $0x290] ss:$8 sps:$4 sm:$0xff]  }
 0x1c3   : > { %1484 = vmatprep.subr.bf16.mxu0 %v3796_v24  ;;  %v3838_v24 = vld [vmem:[%s4184_s2 + $0x2a4] ss:$8 sps:$4 sm:$0xff]  }
 0x1c6   : > { %1485 = vmatpush1.bf16.msra.mxu0 %v3794_v11  ;;  %v3836_v11 = vld [vmem:[%s4184_s2 + $0x2a0] ss:$8 sps:$4 sm:$0xff]  }
 0x1c7   : > { %1486 = vmatprep.subr.bf16.mxu0 %v3799_v46  ;;  %v3841_v46 = vld [vmem:[%s4184_s2 + $0x2b4] ss:$8 sps:$4 sm:$0xff]  }
 0x1ca   : > { %1487 = vmatpush1.bf16.msra.mxu0 %v3797_v50  ;;  %v3839_v50 = vld [vmem:[%s4184_s2 + $0x2b0] ss:$8 sps:$4 sm:$0xff]  }
 0x1cb   : > { %1488 = vmatprep.subr.bf16.mxu0 %v3802_v17  ;;  %v3844_v17 = vld [vmem:[%s4184_s2 + $0x2c4] ss:$8 sps:$4 sm:$0xff]  }
 0x1ce   : > { %1489 = vmatpush1.bf16.msra.mxu0 %v3800_v63  ;;  %v3842_v63 = vld [vmem:[%s4184_s2 + $0x2c0] ss:$8 sps:$4 sm:$0xff]  }
 0x1cf   : > { %1490 = vmatprep.subr.bf16.mxu0 %v3805_v18  ;;  %v3847_v18 = vld [vmem:[%s4184_s2 + $0x2d4] ss:$8 sps:$4 sm:$0xff]  }
 0x1d2   : > { %1491 = vmatpush1.bf16.msra.mxu0 %v3803_v56  ;;  %v3845_v56 = vld [vmem:[%s4184_s2 + $0x2d0] ss:$8 sps:$4 sm:$0xff]  }
 0x1d3   : > { %1673 = vmatprep.subr.bf16.mxu0 %v3808_v31  ;;  %v3850_v31 = vld [vmem:[%s4184_s2 + $0x2e4] ss:$8 sps:$4 sm:$0xff]  }
 0x1d5   : > { %1493 = vmatmul.mubr.bf16.vlgmr.msra.gmra.mrb[4].mxu0 %v4712_v25  ;;  %v3817_v25 = vld [vmem:[%s4184_s2 + $0x234] ss:$8 sps:$4 sm:$0xff]  }
 0x1d6   : > { %1502 = vmatprep.mubr.bf16.mxu0 %v4716_v59  ;;  %1674 = vmatpush1.bf16.msra.mxu0 %v3806_v29  ;;  %v1084_v59 = vsel %vm4785_vm5, %v4734_v61, 0  ;;  %v3824_v61 = vld [vmem:[%s4184_s2 + $0x260] ss:$8 sps:$4 sm:$0xff]  }
 0x1d7   : > { %1675 = vmatprep.subr.bf16.mxu0 %v3811_v38  ;;  %v3848_v29 = vld [vmem:[%s4184_s2 + $0x2e0] ss:$8 sps:$4 sm:$0xff]   ;;  %v3853_v38 = vld [vmem:[%s4184_s2 + $0x2f4] ss:$8 sps:$4 sm:$0xff]  }
 0x1da   : > { %1676 = vmatpush1.bf16.msra.mxu0 %v3809_v12  ;;  %v3851_v12 = vld [vmem:[%s4184_s2 + $0x2f0] ss:$8 sps:$4 sm:$0xff]  }
 0x1db   : > { %1677 = vmatprep.subr.bf16.mxu0 %v3814_v19  ;;  %v1083_v19 = vsel %vm4785_vm5, %v4730_v10, 0 }
 0x1dd   : > { %1503 = vmatmul.mubr.bf16.gmra.mrb[8].mxu0 %v4714_v0  ;;  %v3821_v0 = vld [vmem:[%s4184_s2 + $0x250] ss:$8 sps:$4 sm:$0xff]   ;;  %s5155_s2 = scalar_lea.vmem %s5134_s6, %s4158_s21 }
 0x1de   : > { %1678 = vmatpush1.bf16.msra.mxu0 %v3812_v60  ;;  %1705 = vmatprep.mubr.bf16.mxu0 %v1084_v59  ;;  %v1086_v60 = vsel %vm4785_vm5, %v4736_v4, 0  ;;  %v1028_v59 = vld [vmem:[%s5155_s2] sm:$0x3] }
 0x1df   : > { %1679 = vmatprep.subr.bf16.mxu0 %v3817_v25  ;;  %v1085_v25 = vsel %vm4785_vm5, %v4732_v47, 0  ;;  %v1738_v10 = vrot.slane %v1028_v59, %v4682_v52 }
 0x1e2   : > { %1680 = vmatpush1.bf16.msra.mxu0 %v3815_v62  ;;  %v604_v62 = vld [vmem:[%s4163_s24] sm:$0x3] }
 0x1e3   : > { %1681 = vmatprep.subr.bf16.mxu0 %v3820_v1  ;;  %v1742_v1 = vrot.slane %v1028_v59, %v4695_v14 }
 0x1e6   : > { %1682 = vmatpush1.bf16.msra.mxu0 %v3818_v5  ;;  %v1758_v5 = vrot.slane %v604_v62, %v4682_v52 }
 0x1e7   : > { %1683 = vmatprep.subr.bf16.mxu0 %v3823_v6  ;;  %v1762_v6 = vrot.slane %v604_v62, %v4695_v14 }
 0x1ea   : > { %1684 = vmatpush1.bf16.msra.mxu0 %v3821_v0 }
 0x1eb   : > { %1685 = vmatprep.subr.bf16.mxu0 %v3826_v35 }
 0x1ee   : > { %1686 = vmatpush1.bf16.msra.mxu0 %v3824_v61 }
 0x1ef   : > { %1687 = vmatprep.subr.bf16.mxu0 %v3829_v36 }
 0x1f2   : > { %1688 = vmatpush1.bf16.msra.mxu0 %v3827_v13 }
 0x1f3   : > { %1689 = vmatprep.subr.bf16.mxu0 %v3832_v57 }
 0x1f6   : > { %1690 = vmatpush1.bf16.msra.mxu0 %v3830_v8 }
 0x1f7   : > { %1691 = vmatprep.subr.bf16.mxu0 %v3835_v54 }
 0x1fa   : > { %1692 = vmatpush1.bf16.msra.mxu0 %v3833_v42  ;;  %v605_v42 = vld [vmem:[%s4163_s24 + $0x2] sm:$0x3] }
 0x1fb   : > { %1693 = vmatprep.subr.bf16.mxu0 %v3838_v24 }
 0x1fe   : > { %1694 = vmatpush1.bf16.msra.mxu0 %v3836_v11 }
 0x1ff   : > { %1695 = vmatprep.subr.bf16.mxu0 %v3841_v46 }
 0x202   : > { %1696 = vmatpush1.bf16.msra.mxu0 %v3839_v50 }
 0x203   : > { %1697 = vmatprep.subr.bf16.mxu0 %v3844_v17 }
 0x206   : > { %1698 = vmatpush1.bf16.msra.mxu0 %v3842_v63 }
 0x207   : > { %1699 = vmatprep.subr.bf16.mxu0 %v3847_v18  ;;  %v1766_v18 = vrot.slane %v605_v42, %v4682_v52 }
 0x20a   : > { %1700 = vmatpush1.bf16.msra.mxu0 %v3845_v56 }
 0x20b   : > { %1701 = vmatprep.subr.bf16.mxu0 %v3850_v31 }
 0x20e   : > { %1702 = vmatpush1.bf16.msra.mxu0 %v3848_v29 }
 0x20f   : > { %1703 = vmatprep.subr.bf16.mxu0 %v3853_v38  ;;  %v1770_v38 = vrot.slane %v605_v42, %v4695_v14 }
 0x212   : > { %1704 = vmatpush1.bf16.msra.mxu0 %v3851_v12 }
 0x215   : > { %1706 = vmatmul.mubr.bf16.vlgmr.msra.gmra.mrb[4].mxu0 %v1083_v19 }
 0x216   : > { %1715 = vmatprep.mubr.bf16.mxu0 %v1086_v60 }
 0x21d   : > { %1716 = vmatmul.mubr.bf16.gmra.mrb[8].mxu0 %v1085_v25 }
 0x2e8   : > { %v1707_v4 = vpop.f32.mrb[4].mxu0 }
 0x2e9   : > { %v1745_v0 = vadd.f32 %v1738_v10, %v1707_v4  ;;  %v1709_v35 = vpop.f32.mrb[5].mxu0 }
 0x2ea   : > { %v1746_v47 = vadd.f32 %v1742_v1, %v1709_v35  ;;  %v1711_v61 = vpop.f32.mrb[6].mxu0 }
 0x2eb   : > { %v4838_v36 = vadd.f32 %v1758_v5, %v1745_v0  ;;  %v1747_v13 = vadd.f32 %v1738_v10, %v1711_v61  ;;  %v1713_v57 = vpop.f32.mrb[7].mxu0 }
 0x2ec   : > { %v4840_v8 = vadd.f32 %v1762_v6, %v1746_v47  ;;  %v1748_v54 = vadd.f32 %v1742_v1, %v1713_v57 }
 0x2ed   : > { %v1783_v24 = vsub.f32 0.0, %v4838_v36  ;;  %v4844_v11 = vadd.f32 %v1758_v5, %v1747_v13 }
 0x2ee   : > { %v1784_v46 = vsub.f32 0.0, %v4840_v8  ;;  %v4847_v50 = vadd.f32 %v1762_v6, %v1748_v54 }
 0x2ef   : > { %v1791_v17 = vmul.f32 1.442695, %v1783_v24  ;;  %v1785_v63 = vsub.f32 0.0, %v4844_v11 }
 0x2f0   : > { %v1793_v56 = vmul.f32 1.442695, %v1784_v46  ;;  %v1786_v31 = vsub.f32 0.0, %v4847_v50  ;;  %v1717_v29 = vpop.f32.mrb[8].mxu0 }
 0x2f1   : > { %4034 = vpow2.f32 %v1791_v17  ;;  %v1795_v12 = vmul.f32 1.442695, %v1785_v63  ;;  %v1749_v19 = vadd.f32 %v1738_v10, %v1717_v29  ;;  %v1719_v60 = vpop.f32.mrb[9].mxu0 }
 0x2f2   : > { %4036 = vpow2.f32 %v1793_v56  ;;  %v1797_v25 = vmul.f32 1.442695, %v1786_v31  ;;  %v1750_v59 = vadd.f32 %v1742_v1, %v1719_v60  ;;  %v1721_v62 = vpop.f32.mrb[10].mxu0 }
 0x2f3   : > { %4038 = vpow2.f32 %v1795_v12  ;;  %v1779_v5 = vadd.f32 %v1766_v18, %v1749_v19  ;;  %v1751_v4 = vadd.f32 %v1738_v10, %v1721_v62  ;;  %v1723_v6 = vpop.f32.mrb[11].mxu0 }
 0x2f4   : > { %4040 = vpow2.f32 %v1797_v25  ;;  %v1780_v0 = vadd.f32 %v1770_v38, %v1750_v59  ;;  %v1752_v35 = vadd.f32 %v1742_v1, %v1723_v6 }
 0x2f5   : > { %v1787_v47 = vsub.f32 0.0, %v1779_v5  ;;  %v1781_v61 = vadd.f32 %v1766_v18, %v1751_v4 }
 0x2f6   : > { %v1788_v13 = vsub.f32 0.0, %v1780_v0  ;;  %v1782_v57 = vadd.f32 %v1770_v38, %v1752_v35 }
 0x2f7   : > { %v1799_v54 = vmul.f32 1.442695, %v1787_v47  ;;  %v1789_v42 = vsub.f32 0.0, %v1781_v61 }
 0x2f8   : > { %v1801_v24 = vmul.f32 1.442695, %v1788_v13  ;;  %v1790_v46 = vsub.f32 0.0, %v1782_v57 }
 0x2f9   : > { %4042 = vpow2.f32 %v1799_v54  ;;  %v1803_v17 = vmul.f32 1.442695, %v1789_v42 }
 0x2fa   : > { %4044 = vpow2.f32 %v1801_v24  ;;  %v1805_v63 = vmul.f32 1.442695, %v1790_v46 }
 0x2fb   : > { %v4035_v56 = vpop.eup %4034  ;;  %4046 = vpow2.f32 %v1803_v17 }
 0x2fc   : > { %v4037_v31 = vpop.eup %4036  ;;  %4048 = vpow2.f32 %v1805_v63  ;;  %v1807_v1 = vadd.f32 1.0, %v4035_v56 }
 0x2fd   : > { %v4039_v10 = vpop.eup %4038  ;;  %v1808_v29 = vadd.f32 1.0, %v4037_v31 }
 0x2fe   : > { %v4041_v12 = vpop.eup %4040  ;;  %v1809_v19 = vadd.f32 1.0, %v4039_v10 }
 0x2ff   : > { %4050 = vrcp.f32 %v1808_v29  ;;  %v1810_v18 = vadd.f32 1.0, %v4041_v12 }
 0x300   : > { %4052 = vrcp.f32 %v1809_v19 }
 0x301   : > { %4054 = vrcp.f32 %v1810_v18 }
 0x302   : > { %4056 = vrcp.f32 %v1807_v1 }
 0x303   : > { %v4043_v38 = vpop.eup %4042 }
 0x304   : > { %v4045_v60 = vpop.eup %4044  ;;  %v1811_v25 = vadd.f32 1.0, %v4043_v38 }
 0x305   : > { %v4047_v59 = vpop.eup %4046  ;;  %v1812_v62 = vadd.f32 1.0, %v4045_v60 }
 0x306   : > { %v4049_v4 = vpop.eup %4048  ;;  %4058 = vrcp.f32 %v1811_v25  ;;  %v1813_v6 = vadd.f32 1.0, %v4047_v59 }
 0x307   : > { %4060 = vrcp.f32 %v1812_v62  ;;  %v1814_v35 = vadd.f32 1.0, %v4049_v4 }
 0x308   : > { %4062 = vrcp.f32 %v1813_v6 }
 0x309   : > { %v4051_v47 = vpop.eup %4050  ;;  %4064 = vrcp.f32 %v1814_v35 }
 0x30a   : > { %v4053_v13 = vpop.eup %4052  ;;  %v4860_v17 = vmul.f32 %v4051_v47, %v4840_v8 }
 0x30b   : > { %v4055_v54 = vpop.eup %4054  ;;  %v4857_v46 = vmul.f32 %v4053_v13, %v4844_v11 }
 0x30c   : > { %v4057_v42 = vpop.eup %4056  ;;  %v4854_v24 = vmul.f32 %v4055_v54, %v4847_v50  ;;  %v1852_v11 = vmul.f32 %v4860_v17, %v4860_v17 }
 0x30d   : > { %v4863_v63 = vmul.f32 %v4057_v42, %v4838_v36 }
 0x30e   : > { %v1854_v31 = vmul.f32 %v4854_v24, %v4854_v24  ;;  %v1842_v8 = vadd.f32 %v4854_v24, %v4860_v17 }
 0x30f   : > { %v1833_v29 = vadd.f32 %v4857_v46, %v4863_v63 }
 0x310   : > { %v4059_v56 = vpop.eup %4058  ;;  %v1868_v38 = vadd.f32 %v1854_v31, %v1852_v11 }
 0x311   : > { %v4061_v10 = vpop.eup %4060  ;;  %v4869_v12 = vmul.f32 %v4059_v56, %v1779_v5 }
 0x312   : > { %v4063_v50 = vpop.eup %4062  ;;  %v4875_v1 = vmul.f32 %v4061_v10, %v1780_v0 }
 0x313   : > { %v4065_v36 = vpop.eup %4064  ;;  %v1834_v19 = vadd.f32 %v1833_v29, %v4869_v12  ;;  %v4878_v18 = vmul.f32 %v4063_v50, %v1781_v61 }
 0x314   : > { %v1856_v60 = vmul.f32 %v4875_v1, %v4875_v1  ;;  %v4882_v5 = vmul.f32 %v4065_v36, %v1782_v57  ;;  %v1843_v25 = vadd.f32 %v1842_v8, %v4875_v1 }
 0x315   : > { %v1835_v59 = vadd.f32 %v1834_v19, %v4878_v18 }
 0x316   : > { %v1869_v62 = vadd.f32 %v1868_v38, %v1856_v60  ;;  %v1858_v0 = vmul.f32 %v4882_v5, %v4882_v5  ;;  %v1844_v4 = vadd.f32 %v1843_v25, %v4882_v5  ;;  %v3874_v25 = vld [vmem:[%s4193_s19 + $0x64] ss:$8 sps:$4 sm:$0xff]  }
 0x317   : > { %v1836_v6 = vrot.slane %v1835_v59, 4 }
 0x318   : > { %v1845_v35 = vrot.slane %v1844_v4, 4  ;;  %v1870_v61 = vadd.f32 %v1869_v62, %v1858_v0  ;;  %v3877_v62 = vld [vmem:[%s4193_s19 + $0x74] ss:$8 sps:$4 sm:$0xff]   ;;  %v3875_v0 = vld [vmem:[%s4193_s19 + $0x70] ss:$8 sps:$4 sm:$0xff]  }
 0x319   : > { %v1837_v47 = vadd.f32 %v1836_v6, %v1835_v59  ;;  %v3872_v59 = vld [vmem:[%s4193_s19 + $0x60] ss:$8 sps:$4 sm:$0xff]  }
 0x31a   : > { %v1846_v13 = vadd.f32 %v1845_v35, %v1844_v4  ;;  %v1871_v54 = vrot.slane %v1870_v61, 4  ;;  %v3880_v4 = vld [vmem:[%s4193_s19 + $0x84] ss:$8 sps:$4 sm:$0xff]   ;;  %v3878_v6 = vld [vmem:[%s4193_s19 + $0x80] ss:$8 sps:$4 sm:$0xff]  }
 0x31b   : > { %v1838_v42 = vrot.slane %v1837_v47, 2  ;;  %v3883_v35 = vld [vmem:[%s4193_s19 + $0x94] ss:$8 sps:$4 sm:$0xff]  }
 0x31c   : > { %v1847_v56 = vrot.slane %v1846_v13, 2  ;;  %v1872_v57 = vadd.f32 %v1871_v54, %v1870_v61  ;;  %v3881_v61 = vld [vmem:[%s4193_s19 + $0x90] ss:$8 sps:$4 sm:$0xff]   ;;  %v3889_v54 = vld [vmem:[%s4193_s19 + $0xb4] ss:$8 sps:$4 sm:$0xff]  }
 0x31d   : > { %v1839_v31 = vadd.f32 %v1838_v42, %v1837_v47  ;;  %v3886_v47 = vld [vmem:[%s4193_s19 + $0xa4] ss:$8 sps:$4 sm:$0xff]   ;;  %v3887_v42 = vld [vmem:[%s4193_s19 + $0xb0] ss:$8 sps:$4 sm:$0xff]  }
 0x31e   : > { %v1848_v10 = vadd.f32 %v1847_v56, %v1846_v13  ;;  %v1873_v29 = vrot.slane %v1872_v57, 2  ;;  %v3884_v13 = vld [vmem:[%s4193_s19 + $0xa0] ss:$8 sps:$4 sm:$0xff]   ;;  %v3892_v56 = vld [vmem:[%s4193_s19 + $0xc4] ss:$8 sps:$4 sm:$0xff]  }
 0x31f   : > { %v1840_v50 = vrot.slane %v1839_v31, 1 }
 0x320   : > { %v1849_v11 = vrot.slane %v1848_v10, 1  ;;  %v1874_v8 = vadd.f32 %v1873_v29, %v1872_v57  ;;  %v3890_v57 = vld [vmem:[%s4193_s19 + $0xc0] ss:$8 sps:$4 sm:$0xff]   ;;  %v3898_v29 = vld [vmem:[%s4193_s19 + $0xe4] ss:$8 sps:$4 sm:$0xff]  }
 0x321   : > { %v1841_v38 = vadd.f32 %v1840_v50, %v1839_v31  ;;  %v3895_v31 = vld [vmem:[%s4193_s19 + $0xd4] ss:$8 sps:$4 sm:$0xff]   ;;  %v3896_v50 = vld [vmem:[%s4193_s19 + $0xe0] ss:$8 sps:$4 sm:$0xff]  }
 0x322   : > { %v1850_v36 = vadd.f32 %v1849_v11, %v1848_v10  ;;  %v1875_v19 = vrot.slane %v1874_v8, 1  ;;  %v3893_v10 = vld [vmem:[%s4193_s19 + $0xd0] ss:$8 sps:$4 sm:$0xff]   ;;  %v3901_v11 = vld [vmem:[%s4193_s19 + $0xf4] ss:$8 sps:$4 sm:$0xff]  }
 0x324   : > { %1941 = vmatprep.mubr.f32.mxu1 %v1850_v36  ;;  %v1876_v60 = vadd.f32 %v1875_v19, %v1874_v8  ;;  %v3899_v8 = vld [vmem:[%s4193_s19 + $0xf0] ss:$8 sps:$4 sm:$0xff]   ;;  %v3904_v36 = vld [vmem:[%s4193_s19 + $0x104] ss:$8 sps:$4 sm:$0xff]  }
 0x325   : > { %1942 = vmatmul.mubr.f32.vlgmr.msra.gmra.mrb[0].mxu1 %v1841_v38 }
 0x326   : > { %3608 = vmatpush1.bf16.msra.mxu1 %v4244_v15  ;;  %2014 = vmatprep.mubr.f32.mxu1 %v1876_v60  ;;  %v1853_v15 = vmul.f32 %v4857_v46, %v4857_v46 }
 0x327   : > { %3610 = vmatprep.subr.bf16.mxu1 %v4246_v16  ;;  %v1851_v16 = vmul.f32 %v4863_v63, %v4863_v63 }
 0x32a   : > { %3612 = vmatpush1.bf16.msra.mxu1 %v4263_v21  ;;  %v1855_v21 = vmul.f32 %v4869_v12, %v4869_v12 }
 0x32b   : > { %3614 = vmatprep.subr.bf16.mxu1 %v4267_v22  ;;  %v1859_v22 = vadd.f32 %v1853_v15, %v1851_v16 }
 0x32e   : > { %3616 = vmatpush1.bf16.msra.mxu1 %v4283_v27  ;;  %v1860_v27 = vadd.f32 %v1859_v22, %v1855_v21 }
 0x32f   : > { %3618 = vmatprep.subr.bf16.mxu1 %v4287_v28  ;;  %v1857_v28 = vmul.f32 %v4878_v18, %v4878_v18 }
 0x332   : > { %3620 = vmatpush1.bf16.msra.mxu1 %v4303_v33  ;;  %v1861_v33 = vadd.f32 %v1860_v27, %v1857_v28 }
 0x333   : > { %3622 = vmatprep.subr.bf16.mxu1 %v4307_v34 }
 0x334   : > { %v1862_v34 = vrot.slane %v1861_v33, 4 }
 0x336   : > { %3624 = vmatpush1.bf16.msra.mxu1 %v4323_v39  ;;  %v1863_v39 = vadd.f32 %v1862_v34, %v1861_v33 }
 0x337   : > { %3626 = vmatprep.subr.bf16.mxu1 %v4327_v40 }
 0x338   : > { %v1864_v40 = vrot.slane %v1863_v39, 2 }
 0x33a   : > { %3628 = vmatpush1.bf16.msra.mxu1 %v4343_v45  ;;  %v1865_v45 = vadd.f32 %v1864_v40, %v1863_v39 }
 0x33b   : > { %3630 = vmatprep.subr.bf16.mxu1 %v4356_v49  ;;  %v5156_v49 = vld [vmem:[#allocation4_spill] sm:$0xff] }
 0x33e   : > { %3632 = vmatpush1.bf16.msra.mxu1 %v4374_v58  ;;  %v5157_v58 = vld [vmem:[#allocation5_spill] sm:$0xff] }
 0x33f   : > { %3634 = vmatprep.subr.bf16.mxu1 %v4396_v7  ;;  %v1866_v7 = vrot.slane %v1865_v45, 1 }
 0x342   : > { %3636 = vmatpush1.bf16.msra.mxu1 %v4413_v20  ;;  %v5158_v20 = vld [vmem:[#allocation6_spill] sm:$0xff] }
 0x343   : > { %3638 = vmatprep.subr.bf16.mxu1 %v4423_v26  ;;  %v1867_v26 = vadd.f32 %v1866_v7, %v1865_v45 }
 0x346   : > { %3640 = vmatpush1.bf16.msra.mxu1 %v4433_v32  ;;  %v3854_v32 = vld [vmem:[%s4193_s19] ss:$8 sps:$4 sm:$0xff]  }
 0x347   : > { %3642 = vmatprep.subr.bf16.mxu1 %v4443_v37  ;;  %v3856_v37 = vld [vmem:[%s4193_s19 + $0x4] ss:$8 sps:$4 sm:$0xff]  }
 0x34a   : > { %3644 = vmatpush1.bf16.msra.mxu1 %v4453_v43  ;;  %v3859_v43 = vld [vmem:[%s4193_s19 + $0x14] ss:$8 sps:$4 sm:$0xff]  }
 0x34b   : > { %3646 = vmatprep.subr.bf16.mxu1 %v4463_v48  ;;  %v3857_v48 = vld [vmem:[%s4193_s19 + $0x10] ss:$8 sps:$4 sm:$0xff]  }
 0x34e   : > { %3648 = vmatpush1.bf16.msra.mxu1 %v4473_v3  ;;  %v3862_v3 = vld [vmem:[%s4193_s19 + $0x24] ss:$8 sps:$4 sm:$0xff]  }
 0x34f   : > { %3650 = vmatprep.subr.bf16.mxu1 %v4483_v9  ;;  %v3860_v9 = vld [vmem:[%s4193_s19 + $0x20] ss:$8 sps:$4 sm:$0xff]  }
 0x352   : > { %3652 = vmatpush1.bf16.msra.mxu1 %v4493_v23  ;;  %v3865_v23 = vld [vmem:[%s4193_s19 + $0x34] ss:$8 sps:$4 sm:$0xff]  }
 0x353   : > { %3654 = vmatprep.subr.bf16.mxu1 %v4503_v30  ;;  %v3863_v30 = vld [vmem:[%s4193_s19 + $0x30] ss:$8 sps:$4 sm:$0xff]  }
 0x356   : > { %3656 = vmatpush1.bf16.msra.mxu1 %v4519_v41  ;;  %v3868_v41 = vld [vmem:[%s4193_s19 + $0x44] ss:$8 sps:$4 sm:$0xff]  }
 0x357   : > { %3658 = vmatprep.subr.bf16.mxu1 %v4523_v44  ;;  %v3866_v44 = vld [vmem:[%s4193_s19 + $0x40] ss:$8 sps:$4 sm:$0xff]  }
 0x35a   : > { %3660 = vmatpush1.bf16.msra.mxu1 %v4529_v55  ;;  %v3871_v55 = vld [vmem:[%s4193_s19 + $0x54] ss:$8 sps:$4 sm:$0xff]  }
 0x35b   : > { %3662 = vmatprep.subr.bf16.mxu1 %v4547_v2  ;;  %v3869_v2 = vld [vmem:[%s4193_s19 + $0x50] ss:$8 sps:$4 sm:$0xff]  }
 0x35e   : > { %3664 = vmatpush1.bf16.msra.mxu1 %v5156_v49 }
 0x35f   : > { %3666 = vmatprep.subr.bf16.mxu1 %v5157_v58 }
 0x362   : > { %3668 = vmatpush1.bf16.msra.mxu1 %v5158_v20  ;;  %v1831_v20 = vld [vmem:[%s497_s23] sm:$0x3] }
 0x363   : > { %2418 = vmatprep.subr.bf16.mxu1 %v3856_v37  ;;  %v2073_v37 = vrot.slane %v1831_v20, %v4695_v14 }
 0x365   : > { %2015 = vmatmul.mubr.f32.vlgmr.msra.gmra.mrb[2].mxu1 %v1867_v26 }
 0x366   : > { %2419 = vmatpush1.bf16.msra.mxu1 %v3854_v32  ;;  %v1832_v32 = vld [vmem:[%s501_s27] sm:$0x3] }
 0x367   : > { %2420 = vmatprep.subr.bf16.mxu1 %v3859_v43  ;;  %v2069_v43 = vrot.slane %v1831_v20, %v4682_v52 }
 0x36a   : > { %2421 = vmatpush1.bf16.msra.mxu1 %v3857_v48 }
 0x36b   : > { %2422 = vmatprep.subr.bf16.mxu1 %v3862_v3 }
 0x36e   : > { %2423 = vmatpush1.bf16.msra.mxu1 %v3860_v9 }
 0x36f   : > { %2424 = vmatprep.subr.bf16.mxu1 %v3865_v23  ;;  %v2092_v23 = vrot.slane %v1832_v32, %v4695_v14 }
 0x372   : > { %2425 = vmatpush1.bf16.msra.mxu1 %v3863_v30  ;;  %v2088_v30 = vrot.slane %v1832_v32, %v4682_v52 }
 0x373   : > { %2426 = vmatprep.subr.bf16.mxu1 %v3868_v41 }
 0x376   : > { %2427 = vmatpush1.bf16.msra.mxu1 %v3866_v44 }
 0x377   : > { %2428 = vmatprep.subr.bf16.mxu1 %v3871_v55 }
 0x37a   : > { %2429 = vmatpush1.bf16.msra.mxu1 %v3869_v2 }
 0x37b   : > { %2430 = vmatprep.subr.bf16.mxu1 %v3874_v25 }
 0x37e   : > { %2431 = vmatpush1.bf16.msra.mxu1 %v3872_v59 }
 0x37f   : > { %2432 = vmatprep.subr.bf16.mxu1 %v3877_v62 }
 0x382   : > { %2433 = vmatpush1.bf16.msra.mxu1 %v3875_v0 }
 0x383   : > { %2434 = vmatprep.subr.bf16.mxu1 %v3880_v4 }
 0x386   : > { %2435 = vmatpush1.bf16.msra.mxu1 %v3878_v6 }
 0x387   : > { %2436 = vmatprep.subr.bf16.mxu1 %v3883_v35 }
 0x38a   : > { %2437 = vmatpush1.bf16.msra.mxu1 %v3881_v61 }
 0x38b   : > { %2438 = vmatprep.subr.bf16.mxu1 %v3886_v47 }
 0x38e   : > { %2439 = vmatpush1.bf16.msra.mxu1 %v3884_v13 }
 0x38f   : > { %2440 = vmatprep.subr.bf16.mxu1 %v3889_v54 }
 0x392   : > { %2441 = vmatpush1.bf16.msra.mxu1 %v3887_v42 }
 0x393   : > { %2442 = vmatprep.subr.bf16.mxu1 %v3892_v56 }
 0x396   : > { %2443 = vmatpush1.bf16.msra.mxu1 %v3890_v57 }
 0x397   : > { %2444 = vmatprep.subr.bf16.mxu1 %v3895_v31 }
 0x39a   : > { %2445 = vmatpush1.bf16.msra.mxu1 %v3893_v10 }
 0x39b   : > { %2446 = vmatprep.subr.bf16.mxu1 %v3898_v29 }
 0x39e   : > { %2447 = vmatpush1.bf16.msra.mxu1 %v3896_v50 }
 0x39f   : > { %2448 = vmatprep.subr.bf16.mxu1 %v3901_v11 }
 0x3a2   : > { %2449 = vmatpush1.bf16.msra.mxu1 %v3899_v8 }
 0x3a3   : > { %2631 = vmatprep.subr.bf16.mxu1 %v3904_v36 }
 0x3f8   : > { %v1943_v19 = vpop.f32.mrb[0].mxu1 }
 0x3f9   : > { %v1945_v38 = vpop.f32.mrb[1].mxu1  ;;  %v1948_v60 = vmul.f32 0.001953125, %v1943_v19 }
 0x3fa   : > { %v1949_v15 = vmul.f32 0.001953125, %v1945_v38 }
 0x3fb   : > { %v2023_v21 = vmul.f32 %v1948_v60, %v1948_v60  ;;  %v2032_v7 = vrot.slane %v1948_v60, %v4682_v52 }
 0x3fc   : > { %v2024_v28 = vmul.f32 %v1949_v15, %v1949_v15  ;;  %v2036_v26 = vrot.slane %v1949_v15, %v4682_v52 }
 0x3fd   : > { %v2037_v3 = vsub.f32 %v4863_v63, %v2032_v7  ;;  %v2039_v9 = vsub.f32 %v4857_v46, %v2032_v7  ;;  %v2041_v44 = vsub.f32 %v4869_v12, %v2032_v7  ;;  %v2043_v55 = vsub.f32 %v4878_v18, %v2032_v7 }
 0x3fe   : > { %v2038_v2 = vsub.f32 %v4860_v17, %v2036_v26  ;;  %v2040_v59 = vsub.f32 %v4854_v24, %v2036_v26  ;;  %v2042_v62 = vsub.f32 %v4875_v1, %v2036_v26  ;;  %v2044_v63 = vsub.f32 %v4882_v5, %v2036_v26 }
 0x438   : > { %v2016_v16 = vpop.f32.mrb[2].mxu1 }
 0x439   : > { %v2021_v22 = vmul.f32 0.001953125, %v2016_v16  ;;  %v2018_v27 = vpop.f32.mrb[3].mxu1 }
 0x43a   : > { %v2022_v33 = vmul.f32 0.001953125, %v2018_v27 }
 0x43b   : > { %v2025_v34 = vsub.f32 %v2021_v22, %v2023_v21 }
 0x43c   : > { %v2026_v39 = vsub.f32 %v2022_v33, %v2024_v28 }
 0x43d   : > { %v2027_v40 = vmax.f32 %v2025_v34, 0.0 }
 0x43e   : > { %v2028_v45 = vmax.f32 %v2026_v39, 0.0 }
 0x43f   : > { %v2045_v49 = vadd.f32 1e-05, %v2027_v40 }
 0x440   : > { %v2046_v58 = vadd.f32 1e-05, %v2028_v45 }
 0x441   : > { %4066 = vrsqrt.f32 %v2045_v49 }
 0x442   : > { %4068 = vrsqrt.f32 %v2046_v58 }
 0x44b   : > { %v4067_v48 = vpop.eup %4066 }
 0x44c   : > { %v4069_v41 = vpop.eup %4068  ;;  %v2052_v25 = vrot.slane %v4067_v48, %v4682_v52 }
 0x44d   : > { %v2056_v46 = vrot.slane %v4069_v41, %v4682_v52 }
 0x44e   : > { %v2057_v0 = vmul.f32 %v2052_v25, %v2037_v3  ;;  %v2059_v4 = vmul.f32 %v2052_v25, %v2039_v9  ;;  %v2061_v6 = vmul.f32 %v2052_v25, %v2041_v44  ;;  %v2063_v35 = vmul.f32 %v2052_v25, %v2043_v55  ;;  %v3907_v44 = vld [vmem:[%s4193_s19 + $0x114] ss:$8 sps:$4 sm:$0xff]  }
 0x44f   : > { %v2058_v61 = vmul.f32 %v2056_v46, %v2038_v2  ;;  %v2060_v12 = vmul.f32 %v2056_v46, %v2040_v59  ;;  %v2062_v47 = vmul.f32 %v2056_v46, %v2042_v62  ;;  %v2064_v18 = vmul.f32 %v2056_v46, %v2044_v63  ;;  %v3905_v59 = vld [vmem:[%s4193_s19 + $0x110] ss:$8 sps:$4 sm:$0xff]   ;;  %v3910_v62 = vld [vmem:[%s4193_s19 + $0x124] ss:$8 sps:$4 sm:$0xff]   ;;  %v3908_v46 = vld [vmem:[%s4193_s19 + $0x120] ss:$8 sps:$4 sm:$0xff]  }
 0x450   : > { %v2076_v13 = vmul.f32 %v2069_v43, %v2057_v0  ;;  %v2078_v17 = vmul.f32 %v2069_v43, %v2059_v4  ;;  %v2080_v54 = vmul.f32 %v2069_v43, %v2061_v6  ;;  %v2082_v42 = vmul.f32 %v2069_v43, %v2063_v35  ;;  %v3913_v0 = vld [vmem:[%s4193_s19 + $0x134] ss:$8 sps:$4 sm:$0xff]   ;;  %v3911_v6 = vld [vmem:[%s4193_s19 + $0x130] ss:$8 sps:$4 sm:$0xff]   ;;  %v3916_v35 = vld [vmem:[%s4193_s19 + $0x144] ss:$8 sps:$4 sm:$0xff]  }
 0x451   : > { %v2077_v56 = vmul.f32 %v2073_v37, %v2058_v61  ;;  %v2079_v24 = vmul.f32 %v2073_v37, %v2060_v12  ;;  %v2081_v57 = vmul.f32 %v2073_v37, %v2062_v47  ;;  %v2083_v1 = vmul.f32 %v2073_v37, %v2064_v18  ;;  %v3914_v61 = vld [vmem:[%s4193_s19 + $0x140] ss:$8 sps:$4 sm:$0xff]   ;;  %v3919_v12 = vld [vmem:[%s4193_s19 + $0x154] ss:$8 sps:$4 sm:$0xff]   ;;  %v3917_v47 = vld [vmem:[%s4193_s19 + $0x150] ss:$8 sps:$4 sm:$0xff]  }
 0x452   : > { %v2095_v31 = vadd.f32 %v2088_v30, %v2076_v13  ;;  %v2097_v5 = vadd.f32 %v2088_v30, %v2078_v17  ;;  %v2099_v10 = vadd.f32 %v2088_v30, %v2080_v54  ;;  %v2101_v29 = vadd.f32 %v2088_v30, %v2082_v42  ;;  %v3902_v30 = vld [vmem:[%s4193_s19 + $0x100] ss:$8 sps:$4 sm:$0xff]   ;;  %v3925_v13 = vld [vmem:[%s4193_s19 + $0x174] ss:$8 sps:$4 sm:$0xff]   ;;  %v3923_v17 = vld [vmem:[%s4193_s19 + $0x170] ss:$8 sps:$4 sm:$0xff]  }
 0x453   : > { %v2096_v50 = vadd.f32 %v2092_v23, %v2077_v56  ;;  %v2098_v11 = vadd.f32 %v2092_v23, %v2079_v24  ;;  %v2100_v8 = vadd.f32 %v2092_v23, %v2081_v57  ;;  %v2102_v36 = vadd.f32 %v2092_v23, %v2083_v1  ;;  %v3920_v18 = vld [vmem:[%s4193_s19 + $0x160] ss:$8 sps:$4 sm:$0xff]   ;;  %v3928_v54 = vld [vmem:[%s4193_s19 + $0x184] ss:$8 sps:$4 sm:$0xff]   ;;  %v3931_v56 = vld [vmem:[%s4193_s19 + $0x194] ss:$8 sps:$4 sm:$0xff]  }
 0x454   : > { %v4987_v19 = vpack.c.bf16 %v2097_v5, %v2095_v31  ;;  %v4989_v38 = vpack.c.bf16 %v2101_v29, %v2099_v10  ;;  %v3926_v42 = vld [vmem:[%s4193_s19 + $0x180] ss:$8 sps:$4 sm:$0xff]   ;;  %v3929_v24 = vld [vmem:[%s4193_s19 + $0x190] ss:$8 sps:$4 sm:$0xff]   ;;  %v3934_v57 = vld [vmem:[%s4193_s19 + $0x1a4] ss:$8 sps:$4 sm:$0xff]  }
 0x455   : > { %v2104_v60 = vpack.c.bf16 %v2098_v11, %v2096_v50  ;;  %v4991_v15 = vpack.c.bf16 %v2102_v36, %v2100_v8  ;;  %v3932_v1 = vld [vmem:[%s4193_s19 + $0x1a0] ss:$8 sps:$4 sm:$0xff]   ;;  %v3937_v31 = vld [vmem:[%s4193_s19 + $0x1b4] ss:$8 sps:$4 sm:$0xff]   ;;  %v3935_v5 = vld [vmem:[%s4193_s19 + $0x1b0] ss:$8 sps:$4 sm:$0xff]  }
 0x456   : > { %v2207_v16 = vshrl.u32 %v4987_v19, 16  ;;  %v2210_v21 = vshll.u32 %v4987_v19, 16  ;;  %v2224_v22 = vshll.u32 %v4989_v38, 16  ;;  %v2221_v45 = vshrl.u32 %v4989_v38, 16  ;;  %v3940_v10 = vld [vmem:[%s4193_s19 + $0x1c4] ss:$8 sps:$4 sm:$0xff]  }
 0x457   : > { %v2214_v27 = vshrl.u32 %v2104_v60, 16  ;;  %v2217_v28 = vshll.u32 %v2104_v60, 16  ;;  %v2228_v33 = vshrl.u32 %v4991_v15, 16  ;;  %v2231_v34 = vshll.u32 %v4991_v15, 16  ;;  %v3938_v29 = vld [vmem:[%s4193_s19 + $0x1c0] ss:$8 sps:$4 sm:$0xff]  }
 0x458   : > { %v2209_v39 = vrot.slane %v2207_v16, 7  ;;  %v2242_v40 = vrot.slane %v2210_v21, 1  ;;  %v2246_v49 = vrot.slane %v2224_v22, 1  ;;  %v2223_v2 = vrot.slane %v2221_v45, 7  ;;  %v3943_v50 = vld [vmem:[%s4193_s19 + $0x1d4] ss:$8 sps:$4 sm:$0xff]  }
 0x459   : > { %v2216_v58 = vrot.slane %v2214_v27, 7  ;;  %v2230_v7 = vrot.slane %v2228_v33, 7  ;;  %v2244_v20 = vrot.slane %v2217_v28, 1  ;;  %v2248_v26 = vrot.slane %v2231_v34, 1  ;;  %v3941_v11 = vld [vmem:[%s4193_s19 + $0x1d0] ss:$8 sps:$4 sm:$0xff]  }
 0x45a   : > { %v2212_v32 = vor.u32 %v2210_v21, %v2209_v39  ;;  %v4999_v37 = vor.u32 %v2242_v40, %v2207_v16  ;;  %v5001_v43 = vor.u32 %v2246_v49, %v2221_v45  ;;  %v2226_v63 = vor.u32 %v2224_v22, %v2223_v2  ;;  %v3946_v8 = vld [vmem:[%s4193_s19 + $0x1e4] ss:$8 sps:$4 sm:$0xff]   ;;  %v3944_v36 = vld [vmem:[%s4193_s19 + $0x1e0] ss:$8 sps:$4 sm:$0xff]   ;;  %v3947_v16 = vld [vmem:[%s4193_s19 + $0x1f0] ss:$8 sps:$4 sm:$0xff]  }
 0x45b   : > { %v2219_v48 = vor.u32 %v2217_v28, %v2216_v58  ;;  %v2233_v3 = vor.u32 %v2231_v34, %v2230_v7  ;;  %v5003_v9 = vor.u32 %v2244_v20, %v2214_v27  ;;  %v5005_v23 = vor.u32 %v2248_v26, %v2228_v33  ;;  %v3952_v21 = vld [vmem:[%s4193_s19 + $0x204] ss:$8 sps:$4 sm:$0xff]   ;;  %v3950_v22 = vld [vmem:[%s4193_s19 + $0x200] ss:$8 sps:$4 sm:$0xff]   ;;  %v3955_v27 = vld [vmem:[%s4193_s19 + $0x214] ss:$8 sps:$4 sm:$0xff]  }
 0x45c   : > { %v2238_v55 = vsel %vm4726_vm2, 0, %v2212_v32  ;;  %v2240_v4 = vsel %vm4726_vm2, 0, %v2226_v63  ;;  %v3953_v28 = vld [vmem:[%s4193_s19 + $0x210] ss:$8 sps:$4 sm:$0xff]   ;;  %v3958_v33 = vld [vmem:[%s4193_s19 + $0x224] ss:$8 sps:$4 sm:$0xff]  }
 0x45d   : > { %v2239_v41 = vsel %vm4726_vm2, 0, %v2219_v48  ;;  %v2241_v25 = vsel %vm4726_vm2, 0, %v2233_v3  ;;  %v3956_v34 = vld [vmem:[%s4193_s19 + $0x220] ss:$8 sps:$4 sm:$0xff]   ;;  %v3961_v39 = vld [vmem:[%s4193_s19 + $0x234] ss:$8 sps:$4 sm:$0xff]  }
 0x45e   : > { %2450 = vmatprep.mubr.bf16.mxu1 %v2239_v41  ;;  %v3964_v40 = vld [vmem:[%s4193_s19 + $0x244] ss:$8 sps:$4 sm:$0xff]   ;;  %v3962_v45 = vld [vmem:[%s4193_s19 + $0x240] ss:$8 sps:$4 sm:$0xff]   ;;  %v3967_v49 = vld [vmem:[%s4193_s19 + $0x254] ss:$8 sps:$4 sm:$0xff]  }
 0x45f   : > { %2451 = vmatmul.mubr.bf16.vlgmr.msra.gmra.mrb[4].mxu1 %v2238_v55  ;;  %v3970_v58 = vld [vmem:[%s4193_s19 + $0x264] ss:$8 sps:$4 sm:$0xff]   ;;  %v3968_v7 = vld [vmem:[%s4193_s19 + $0x260] ss:$8 sps:$4 sm:$0xff]   ;;  %v3973_v20 = vld [vmem:[%s4193_s19 + $0x274] ss:$8 sps:$4 sm:$0xff]  }
 0x460   : > { %2632 = vmatpush1.bf16.msra.mxu1 %v3902_v30  ;;  %2460 = vmatprep.mubr.bf16.mxu1 %v2241_v25  ;;  %v3971_v26 = vld [vmem:[%s4193_s19 + $0x270] ss:$8 sps:$4 sm:$0xff]   ;;  %v3976_v32 = vld [vmem:[%s4193_s19 + $0x284] ss:$8 sps:$4 sm:$0xff]   ;;  %v3974_v48 = vld [vmem:[%s4193_s19 + $0x280] ss:$8 sps:$4 sm:$0xff]  }
 0x461   : > { %2633 = vmatprep.subr.bf16.mxu1 %v3907_v44  ;;  %v3979_v3 = vld [vmem:[%s4193_s19 + $0x294] ss:$8 sps:$4 sm:$0xff]   ;;  %v3982_v30 = vld [vmem:[%s4193_s19 + $0x2a4] ss:$8 sps:$4 sm:$0xff]   ;;  %v3980_v41 = vld [vmem:[%s4193_s19 + $0x2a0] ss:$8 sps:$4 sm:$0xff]  }
 0x462   : > { %v3985_v44 = vld [vmem:[%s4193_s19 + $0x2b4] ss:$8 sps:$4 sm:$0xff]   ;;  %v3983_v55 = vld [vmem:[%s4193_s19 + $0x2b0] ss:$8 sps:$4 sm:$0xff]   ;;  %v3988_v2 = vld [vmem:[%s4193_s19 + $0x2c4] ss:$8 sps:$4 sm:$0xff]  }
 0x463   : > { %v3986_v25 = vld [vmem:[%s4193_s19 + $0x2c0] ss:$8 sps:$4 sm:$0xff]   ;;  %v3994_v63 = vld [vmem:[%s4193_s19 + $0x2e4] ss:$8 sps:$4 sm:$0xff]  }
 0x464   : > { %2634 = vmatpush1.bf16.msra.mxu1 %v3905_v59  ;;  %v3991_v59 = vld [vmem:[%s4193_s19 + $0x2d4] ss:$8 sps:$4 sm:$0xff]  }
 0x465   : > { %2635 = vmatprep.subr.bf16.mxu1 %v3910_v62  ;;  %v3989_v62 = vld [vmem:[%s4193_s19 + $0x2d0] ss:$8 sps:$4 sm:$0xff]  }
 0x467   : > { %2461 = vmatmul.mubr.bf16.gmra.mrb[8].mxu1 %v2240_v4  ;;  %v3995_v4 = vld [vmem:[%s4193_s19 + $0x2f0] ss:$8 sps:$4 sm:$0xff]  }
 0x468   : > { %2636 = vmatpush1.bf16.msra.mxu1 %v3908_v46  ;;  %2663 = vmatprep.mubr.bf16.mxu1 %v2104_v60  ;;  %v3949_v60 = vld [vmem:[%s4193_s19 + $0x1f4] ss:$8 sps:$4 sm:$0xff]   ;;  %v3992_v46 = vld [vmem:[%s4193_s19 + $0x2e0] ss:$8 sps:$4 sm:$0xff]  }
 0x469   : > { %2637 = vmatprep.subr.bf16.mxu1 %v3913_v0  ;;  %v3997_v0 = vld [vmem:[%s4193_s19 + $0x2f4] ss:$8 sps:$4 sm:$0xff]  }
 0x46c   : > { %2638 = vmatpush1.bf16.msra.mxu1 %v3911_v6  ;;  %v2254_v6 = vsel %vm4785_vm5, %v4999_v37, 0 }
 0x46d   : > { %2639 = vmatprep.subr.bf16.mxu1 %v3916_v35  ;;  %v2257_v35 = vsel %vm4785_vm5, %v5005_v23, 0 }
 0x470   : > { %2640 = vmatpush1.bf16.msra.mxu1 %v3914_v61  ;;  %v2256_v61 = vsel %vm4785_vm5, %v5001_v43, 0  ;;  %v4071_v43 = vld [vmem:[#allocation2 + $0x8] sm:$0xff] }
 0x471   : > { %2641 = vmatprep.subr.bf16.mxu1 %v3919_v12  ;;  %v2205_v12 = vld [vmem:[%s510_s15] sm:$0x3] }
 0x472   : > { %v2913_v37 = vrot.slane %v2205_v12, %v4695_v14 }
 0x474   : > { %2642 = vmatpush1.bf16.msra.mxu1 %v3917_v47  ;;  %v2909_v47 = vrot.slane %v2205_v12, %v4682_v52 }
 0x475   : > { %2643 = vmatprep.subr.bf16.mxu1 %v3922_v53 }
 0x478   : > { %2644 = vmatpush1.bf16.msra.mxu1 %v3920_v18 }
 0x479   : > { %2645 = vmatprep.subr.bf16.mxu1 %v3925_v13 }
 0x47c   : > { %2646 = vmatpush1.bf16.msra.mxu1 %v3923_v17 }
 0x47d   : > { %2647 = vmatprep.subr.bf16.mxu1 %v3928_v54  ;;  %v4070_v54 = vld [vmem:[#allocation2] sm:$0xff] }
 0x480   : > { %2648 = vmatpush1.bf16.msra.mxu1 %v3926_v42 }
 0x481   : > { %2649 = vmatprep.subr.bf16.mxu1 %v3931_v56 }
 0x484   : > { %2650 = vmatpush1.bf16.msra.mxu1 %v3929_v24 }
 0x485   : > { %2651 = vmatprep.subr.bf16.mxu1 %v3934_v57 }
 0x488   : > { %2652 = vmatpush1.bf16.msra.mxu1 %v3932_v1  ;;  %v4072_v1 = vld [vmem:[#allocation2 + $0x10] sm:$0xff] }
 0x489   : > { %2653 = vmatprep.subr.bf16.mxu1 %v3937_v31 }
 0x48c   : > { %2654 = vmatpush1.bf16.msra.mxu1 %v3935_v5  ;;  %v4073_v5 = vld [vmem:[#allocation2 + $0x18] sm:$0xff] }
 0x48d   : > { %2655 = vmatprep.subr.bf16.mxu1 %v3940_v10 }
 0x490   : > { %2656 = vmatpush1.bf16.msra.mxu1 %v3938_v29 }
 0x491   : > { %2657 = vmatprep.subr.bf16.mxu1 %v3943_v50 }
 0x494   : > { %2658 = vmatpush1.bf16.msra.mxu1 %v3941_v11 }
 0x495   : > { %2659 = vmatprep.subr.bf16.mxu1 %v3946_v8  ;;  %v4074_v8 = vld [vmem:[#allocation2 + $0x20] sm:$0xff] }
 0x498   : > { %2660 = vmatpush1.bf16.msra.mxu1 %v3944_v36 }
 0x499   : > { %2661 = vmatprep.subr.bf16.mxu1 %v3949_v60 }
 0x49c   : > { %2662 = vmatpush1.bf16.msra.mxu1 %v3947_v16 }
 0x49d   : > { %2844 = vmatprep.subr.bf16.mxu1 %v3952_v21  ;;  %v4075_v21 = vld [vmem:[#allocation2 + $0x28] sm:$0xff] }
 0x49f   : > { %2664 = vmatmul.mubr.bf16.vlgmr.msra.gmra.mrb[4].mxu1 %v4987_v19  ;;  %v2255_v19 = vsel %vm4785_vm5, %v5003_v9, 0  ;;  %v3977_v9 = vld [vmem:[%s4193_s19 + $0x290] ss:$8 sps:$4 sm:$0xff]  }
 0x4a0   : > { %2673 = vmatprep.mubr.bf16.mxu1 %v4991_v15  ;;  %2845 = vmatpush1.bf16.msra.mxu1 %v3950_v22  ;;  %v3959_v15 = vld [vmem:[%s4193_s19 + $0x230] ss:$8 sps:$4 sm:$0xff]  }
 0x4a1   : > { %2846 = vmatprep.subr.bf16.mxu1 %v3955_v27 }
 0x4a4   : > { %2847 = vmatpush1.bf16.msra.mxu1 %v3953_v28  ;;  %v4076_v28 = vld [vmem:[#allocation2 + $0x30] sm:$0xff] }
 0x4a5   : > { %2848 = vmatprep.subr.bf16.mxu1 %v3958_v33 }
 0x4a7   : > { %2674 = vmatmul.mubr.bf16.gmra.mrb[8].mxu1 %v4989_v38  ;;  %v3965_v38 = vld [vmem:[%s4193_s19 + $0x250] ss:$8 sps:$4 sm:$0xff]  }
 0x4a8   : > { %2849 = vmatpush1.bf16.msra.mxu1 %v3956_v34  ;;  %2876 = vmatprep.mubr.bf16.mxu1 %v2255_v19  ;;  %v4077_v34 = vld [vmem:[#allocation2 + $0x38] sm:$0xff] }
 0x4a9   : > { %2850 = vmatprep.subr.bf16.mxu1 %v3961_v39 }
 0x4ac   : > { %2851 = vmatpush1.bf16.msra.mxu1 %v3959_v15 }
 0x4ad   : > { %2852 = vmatprep.subr.bf16.mxu1 %v3964_v40 }
 0x4b0   : > { %2853 = vmatpush1.bf16.msra.mxu1 %v3962_v45 }
 0x4b1   : > { %2854 = vmatprep.subr.bf16.mxu1 %v3967_v49 }
 0x4b4   : > { %2855 = vmatpush1.bf16.msra.mxu1 %v3965_v38 }
 0x4b5   : > { %2856 = vmatprep.subr.bf16.mxu1 %v3970_v58 }
 0x4b8   : > { %2857 = vmatpush1.bf16.msra.mxu1 %v3968_v7 }
 0x4b9   : > { %2858 = vmatprep.subr.bf16.mxu1 %v3973_v20 }
 0x4bc   : > { %2859 = vmatpush1.bf16.msra.mxu1 %v3971_v26 }
 0x4bd   : > { %2860 = vmatprep.subr.bf16.mxu1 %v3976_v32 }
 0x4c0   : > { %2861 = vmatpush1.bf16.msra.mxu1 %v3974_v48 }
 0x4c1   : > { %2862 = vmatprep.subr.bf16.mxu1 %v3979_v3 }
 0x4c4   : > { %2863 = vmatpush1.bf16.msra.mxu1 %v3977_v9 }
 0x4c5   : > { %2864 = vmatprep.subr.bf16.mxu1 %v3982_v30 }
 0x4c8   : > { %2865 = vmatpush1.bf16.msra.mxu1 %v3980_v41 }
 0x4c9   : > { %2866 = vmatprep.subr.bf16.mxu1 %v3985_v44 }
 0x4cc   : > { %2867 = vmatpush1.bf16.msra.mxu1 %v3983_v55 }
 0x4cd   : > { %2868 = vmatprep.subr.bf16.mxu1 %v3988_v2 }
 0x4d0   : > { %2869 = vmatpush1.bf16.msra.mxu1 %v3986_v25 }
 0x4d1   : > { %2870 = vmatprep.subr.bf16.mxu1 %v3991_v59 }
 0x4d4   : > { %2871 = vmatpush1.bf16.msra.mxu1 %v3989_v62 }
 0x4d5   : > { %2872 = vmatprep.subr.bf16.mxu1 %v3994_v63 }
 0x4d8   : > { %2873 = vmatpush1.bf16.msra.mxu1 %v3992_v46 }
 0x4d9   : > { %2874 = vmatprep.subr.bf16.mxu1 %v3997_v0 }
 0x4dc   : > { %2875 = vmatpush1.bf16.msra.mxu1 %v3995_v4 }
 0x4df   : > { %2877 = vmatmul.mubr.bf16.vlgmr.msra.gmra.mrb[4].mxu1 %v2254_v6 }
 0x4e0   : > { %2886 = vmatprep.mubr.bf16.mxu1 %v2257_v35 }
 0x4e7   : > { %2887 = vmatmul.mubr.bf16.gmra.mrb[8].mxu1 %v2256_v61 }
 0x5b2   : > { %v2878_v53 = vpop.f32.mrb[4].mxu1 }
 0x5b3   : > { %v2916_v18 = vadd.f32 %v2909_v47, %v2878_v53  ;;  %v2880_v13 = vpop.f32.mrb[5].mxu1 }
 0x5b4   : > { %v2917_v17 = vadd.f32 %v2913_v37, %v2880_v13  ;;  %v2882_v23 = vpop.f32.mrb[6].mxu1 }
 0x5b5   : > { %v2924_v42 = vadd.f32 %v4070_v54, %v2916_v18  ;;  %v2918_v56 = vadd.f32 %v2909_v47, %v2882_v23  ;;  %v2884_v51 = vpop.f32.mrb[7].mxu1 }
 0x5b6   : > { %v2925_v24 = vadd.f32 %v4071_v43, %v2917_v17  ;;  %v2919_v57 = vadd.f32 %v2913_v37, %v2884_v51 }
 0x5b7   : > { %2932 = vst [vmem:[#allocation2] sm:$0xff] %v2924_v42  ;;  %v2926_v31 = vadd.f32 %v4072_v1, %v2918_v56  ;;  %2944 = vst [vmem:[%s5139_s11] sm:$0xff] (!%p3410_p5), %v2924_v42 }
 0x5b8   : > { %2933 = vst [vmem:[#allocation2 + $0x8] sm:$0xff] %v2925_v24  ;;  %v2927_v52 = vadd.f32 %v4073_v5, %v2919_v57  ;;  %2945 = vst [vmem:[%s5139_s11 + $0x8] sm:$0xff] (!%p3410_p5), %v2925_v24 }
 0x5b9   : > { %2934 = vst [vmem:[#allocation2 + $0x10] sm:$0xff] %v2926_v31  ;;  %2946 = vst [vmem:[%s5139_s11 + $0x10] sm:$0xff] (!%p3410_p5), %v2926_v31 }
 0x5ba   : > { %2935 = vst [vmem:[#allocation2 + $0x18] sm:$0xff] %v2927_v52  ;;  %v2888_v14 = vpop.f32.mrb[8].mxu1  ;;  %2947 = vst [vmem:[%s5139_s11 + $0x18] sm:$0xff] (!%p3410_p5), %v2927_v52 }
 0x5bb   : > { %v2920_v10 = vadd.f32 %v2909_v47, %v2888_v14  ;;  %v2890_v29 = vpop.f32.mrb[9].mxu1 }
 0x5bc   : > { %v2921_v50 = vadd.f32 %v2913_v37, %v2890_v29  ;;  %v2892_v11 = vpop.f32.mrb[10].mxu1  ;;  %2943 = sbr.rel (%p3410_p5) target bundleno = 1475 (0x5c3), region = 72 }
 0x5bd   : > { %v2928_v36 = vadd.f32 %v4074_v8, %v2920_v10  ;;  %v2922_v60 = vadd.f32 %v2909_v47, %v2892_v11  ;;  %v2894_v16 = vpop.f32.mrb[11].mxu1 }
 0x5be   : > { %v2929_v22 = vadd.f32 %v4075_v21, %v2921_v50  ;;  %v2923_v27 = vadd.f32 %v2913_v37, %v2894_v16 }
 0x5bf   : > { %2936 = vst [vmem:[#allocation2 + $0x20] sm:$0xff] %v2928_v36  ;;  %v2930_v33 = vadd.f32 %v4076_v28, %v2922_v60  ;;  %2948 = vst [vmem:[%s5139_s11 + $0x20] sm:$0xff] (!%p3410_p5), %v2928_v36 }
 0x5c0   : > { %2937 = vst [vmem:[#allocation2 + $0x28] sm:$0xff] %v2929_v22  ;;  %v2931_v39 = vadd.f32 %v4077_v34, %v2923_v27  ;;  %2949 = vst [vmem:[%s5139_s11 + $0x28] sm:$0xff] (!%p3410_p5), %v2929_v22 }
 0x5c1   : > { %2938 = vst [vmem:[#allocation2 + $0x30] sm:$0xff] %v2930_v33  ;;  %2950 = vst [vmem:[%s5139_s11 + $0x30] sm:$0xff] (!%p3410_p5), %v2930_v33 }
 0x5c2   : > { %2939 = vst [vmem:[#allocation2 + $0x38] sm:$0xff] %v2931_v39  ;;  %2951 = vst [vmem:[%s5139_s11 + $0x38] sm:$0xff] (!%p3410_p5), %v2931_v39 }
 0x5c3 PF: > { %s5159_s29 = sld [smem:[#allocation3_spill]] }
 0x5c9   : > { %s21_s17 = sadd.s32 1, %s5159_s29  }
 0x5ca   : > { %p18_p6 = scmp.ge.s32.totalorder %s21_s17, 4  }
 0x5cc   :  { %20 = sbr.rel (!%p18_p6) target bundleno = 2 (0x2), region = 126 }

</bundles_post_ra>
